<compile_context>
chip_gen: v7x
topology: tpu7x:2x2x1
jax: 0.10.0
libtpu: 0.0.40
codegen_flags: <defaults>
</compile_context>

<pallas_src>
import functools
import math

import jax
import jax.numpy as jnp
from jax import lax
from jax.experimental import pallas as pl
from jax.experimental.pallas import tpu as pltpu


def _pair(v):
    return (v, v) if isinstance(v, int) else tuple(v)


def _round_up(x, m):
    return ((x + m - 1) // m) * m


def _cdiv(a, b):
    return -(-a // b)


def _vmem_tile_bytes(shape, itemsize):
    """Rough VMEM footprint of one buffer: last dim padded to 128 lanes, second-to-last
    to 8 sublanes (conservative estimate used only for tile sizing)."""
    s = list(shape)
    if len(s) >= 1:
        s[-1] = _round_up(s[-1], 128)
    if len(s) >= 2:
        s[-2] = _round_up(s[-2], 8)
    n = 1
    for v in s:
        n *= v
    return n * itemsize


def _vmem_capacity_bytes():
    try:
        info = pltpu.get_tpu_info()
        cap = getattr(info, "vmem_capacity_bytes", None)
        if cap:
            return int(cap)
    except Exception:
        pass
    return 64 * 1024 * 1024          # conservative fallback (v7x per-core size)


# ----------------------------- Pallas kernel ---------------------------------
def _fused_phase_kernel(*refs, phase_plan, n_w, row_tile, wq, cin):
    """All s_h*s_w output phases of one (batch, output-row-tile) step.

    refs = (x_ref, w_ref_0..w_ref_{n_w-1}, b_ref, o_ref)
      x_ref : (1, 1, slab_rows, wx, cin)        input row slab (compute dtype)
      w_ref : (K_ph, cp)                        fused tap weights of one phase
      b_ref : (1, cp)                           float32 bias (lane-padded)
      o_ref : (1, s_h, s_w, row_tile, wq, cp)   per-phase outputs (lane/sublane dense)

    phase_plan: tuple of (ph, pw, taps, widx); taps are static (dy, dx) offsets into the
    slab; widx == -1 marks a phase no kernel tap ever reaches (output == bias).
    """
    x_ref = refs[0]
    w_refs = refs[1:1 + n_w]
    b_ref = refs[1 + n_w]
    o_ref = refs[2 + n_w]

    m = row_tile * wq
    bias = b_ref[...]                                        # (1, cp) float32
    cp = bias.shape[-1]

    if any(p[3] < 0 for p in phase_plan):
        bias_tile = jnp.broadcast_to(bias.reshape(1, 1, cp),
                                     (row_tile, wq, cp)).astype(o_ref.dtype)

    for (ph, pw, taps, widx) in phase_plan:
        if widx < 0:                                         # no taps: bias only
            o_ref[0, ph, pw] = bias_tile
            continue
        # Build the im2col LHS in registers (static slices, no VMEM round trip).
        pieces = [x_ref[0, 0, dy:dy + row_tile, dx:dx + wq, :].reshape(m, cin)
                  for (dy, dx) in taps]
        lhs = pieces[0] if len(pieces) == 1 else jnp.concatenate(pieces, axis=-1)
        acc = lax.dot_general(lhs, w_refs[widx][...],
                              dimension_numbers=(((1,), (0,)), ((), ())),
                              preferred_element_type=jnp.float32)
        acc = acc + bias                                     # (m, cp) + (1, cp)
        o_ref[0, ph, pw] = acc.reshape(row_tile, wq, cp).astype(o_ref.dtype)


# -------------------------------- wrapper -------------------------------------
def quaternion_transpose_conv2d(x, r_w, i_w, j_w, k_w, bias,
                                stride, padding, output_padding, dilation,
                                compute_dtype=jnp.bfloat16, target_m=512):
    """x: (N, Cin_total, H, W) NCHW.  Component weights: (Cin_total//4, Cout_total//4, kH, kW).
    Returns (N, Cout_total, Ho, Wo) NCHW, matching torch.nn.functional.conv_transpose2d with
    the quaternion Hamilton weight matrix (groups=1).  Wrap in jax.jit in real models."""
    s_h, s_w = _pair(stride)
    p_h, p_w = _pair(padding)
    op_h, op_w = _pair(output_padding)
    d_h, d_w = _pair(dilation)

    # Hamilton block weight, exactly as torch.cat in quaternion_transpose_conv
    # (cat dim=1 -> out-channel blocks, cat dim=0 -> in-channel blocks).
    row_r = jnp.concatenate([r_w, -i_w, -j_w, -k_w], axis=1)
    row_i = jnp.concatenate([i_w,  r_w, -k_w,  j_w], axis=1)
    row_j = jnp.concatenate([j_w,  k_w,  r_w, -i_w], axis=1)
    row_k = jnp.concatenate([k_w, -j_w,  i_w,  r_w], axis=1)
    Wcat = jnp.concatenate([row_r, row_i, row_j, row_k], axis=0)   # (Cin, Cout, kH, kW)
    Cin, Cout, kH, kW = Wcat.shape

    N, C, Hin, Win = x.shape
    assert C == Cin, "input channels must equal 4 * per-component in_channels"

    # conv_transpose == stride-1 dilated correlation of the zero-inserted/padded input with
    # the spatially flipped, IO-transposed kernel.  We never build that zero-inserted input:
    # for output row oy = ph + s_h*qy only taps ky with (ph + ky*d_h - lo_h) % s_h == 0 hit
    # real data, and they read dense-input row qy + t_h(ky)  (same for columns).
    Wf = jnp.transpose(jnp.flip(Wcat, axis=(2, 3)), (2, 3, 0, 1))  # (kH, kW, Cin, Cout)

    lo_h = d_h * (kH - 1) - p_h
    lo_w = d_w * (kW - 1) - p_w
    Ho = (Hin - 1) * s_h - 2 * p_h + d_h * (kH - 1) + op_h + 1
    Wo = (Win - 1) * s_w - 2 * p_w + d_w * (kW - 1) + op_w + 1

    def _taps_1d(phase, k, d, s, lo):
        return [(kk, (phase + kk * d - lo) // s) for kk in range(k)
                if (phase + kk * d - lo) % s == 0]

    row_taps = [_taps_1d(ph, kH, d_h, s_h, lo_h) for ph in range(s_h)]
    col_taps = [_taps_1d(pw, kW, d_w, s_w, lo_w) for pw in range(s_w)]

    all_t_h = [t for taps in row_taps for (_, t) in taps]
    all_t_w = [t for taps in col_taps for (_, t) in taps]

    cp = _round_up(Cout, 128)                                  # lane-dense output channels
    cbytes = jnp.dtype(compute_dtype).itemsize
    obytes = cbytes                                            # kernel emits compute dtype
    sub = 16 if cbytes == 2 else 8                             # bf16 packs 16 rows / vreg
    bias_p = jnp.pad(bias.astype(jnp.float32), (0, cp - Cout)).reshape(1, cp)

    if not all_t_h or not all_t_w:                             # degenerate: bias only
        return jnp.broadcast_to(bias.astype(x.dtype)[None, :, None, None],
                                (N, Cout, Ho, Wo))

    pl_h = max(0, -min(all_t_h))
    pl_w = max(0, -min(all_t_w))
    halo_h = max(all_t_h) + pl_h
    halo_w = max(all_t_w) + pl_w

    hq0 = max(_cdiv(Ho, s_h), 1)
    wq = _round_up(max(_cdiv(Wo, s_w), 1), sub)                # sublane-aligned width

    ph_w = max(0, wq + (halo_w - pl_w) - Win)                  # keep all column reads in bounds
    wx = pl_w + Win + ph_w
    ph_w += _round_up(wx, sub) - wx                            # sublane-align padded width
    wx = pl_w + Win + ph_w

    # Per-phase tap plan + per-phase fused weight matrices.
    Wf_pad = jnp.pad(Wf, ((0, 0), (0, 0), (0, 0), (0, cp - Cout))).astype(compute_dtype)
    phase_plan, w_mats, kdims = [], [], []
    for ph in range(s_h):
        for pw in range(s_w):
            rts, cts = row_taps[ph], col_taps[pw]
            if not rts or not cts:
                phase_plan.append((ph, pw, (), -1))
                continue
            taps, pieces = [], []
            for ky, ty in rts:
                for kx, tx in cts:
                    taps.append((ty + pl_h, tx + pl_w))
                    pieces.append(Wf_pad[ky, kx])              # (Cin, cp)
            phase_plan.append((ph, pw, tuple(taps), len(w_mats)))
            w_mats.append(jnp.concatenate(pieces, axis=0))     # (T*Cin, cp)
            kdims.append(len(taps) * Cin)

    if not w_mats:                                             # every phase empty
        return jnp.broadcast_to(bias.astype(x.dtype)[None, :, None, None],
                                (N, Cout, Ho, Wo))

    # ---------------- generation-aware tile sizing (VMEM budget) ----------------
    vmem_cap = _vmem_capacity_bytes()
    budget = int(vmem_cap * 0.6)                    # headroom for compiler scratch / spills
    max_k = max(kdims)
    w_bytes = sum(2 * _vmem_tile_bytes((k, cp), cbytes) for k in kdims)
    w_bytes += 2 * _vmem_tile_bytes((1, cp), 4)

    def _footprint(rt):
        fp = 2 * _vmem_tile_bytes((rt + halo_h, wx, Cin), cbytes)            # input slab
        fp += 2 * _vmem_tile_bytes((s_h * s_w * rt, wq, cp), obytes)         # output tile
        fp += w_bytes
        fp += rt * wq * (_round_up(max_k, 128) * cbytes + cp * 4)            # lhs + f32 acc
        return int(fp * 1.25)

    rt = max(1, min(hq0, _cdiv(target_m, wq)))      # aim for M = rt*wq near target_m
    while rt > 1 and _footprint(rt) > budget:
        rt = (rt + 1) // 2
    nt = _cdiv(hq0, rt)
    if N * nt < 2 and hq0 >= 16:                    # give v7x's 2 TensorCores work
        nt = 2
    rt = _cdiv(hq0, nt)                             # re-balance to minimize row padding
    hq = rt * nt
    row_tile = rt

    ph_h = max(0, hq + (halo_h - pl_h) - Hin)       # keep all row reads in bounds
    slab_rows = row_tile + halo_h

    x_nhwc = jnp.transpose(x, (0, 2, 3, 1)).astype(compute_dtype)
    x_pad = jnp.pad(x_nhwc, ((0, 0), (pl_h, ph_h), (pl_w, ph_w), (0, 0)))

    if nt == 1:
        x_slabs = x_pad[:, :slab_rows][:, None]                       # plain slice, no gather
    else:
        # Pre-gather overlapping row slabs so each Pallas block is a plain rectangle.
        row_idx = (jnp.arange(nt, dtype=jnp.int32)[:, None] * row_tile
                   + jnp.arange(slab_rows, dtype=jnp.int32)[None, :]).reshape(-1)
        x_slabs = jnp.take(x_pad, row_idx, axis=1).reshape(N, nt, slab_rows, wx, Cin)

    kern = functools.partial(_fused_phase_kernel, phase_plan=tuple(phase_plan),
                             n_w=len(w_mats), row_tile=row_tile, wq=wq, cin=Cin)

    flops = 2 * N * nt * row_tile * wq * cp * sum(kdims)
    bytes_accessed = (x_slabs.size * x_slabs.dtype.itemsize
                      + sum(w.size * w.dtype.itemsize for w in w_mats)
                      + bias_p.size * 4
                      + N * s_h * s_w * hq * wq * cp * obytes)

    in_specs = [pl.BlockSpec((1, 1, slab_rows, wx, Cin), lambda n, t: (n, t, 0, 0, 0))]
    for k in kdims:
        in_specs.append(pl.BlockSpec((k, cp), lambda n, t: (0, 0)))
    in_specs.append(pl.BlockSpec((1, cp), lambda n, t: (0, 0)))

    y_ph = pl.pallas_call(
        kern,
        out_shape=jax.ShapeDtypeStruct((N, s_h, s_w, hq, wq, cp), compute_dtype),
        grid_spec=pltpu.PrefetchScalarGridSpec(
            num_scalar_prefetch=0,
            grid=(N, nt),
            in_specs=in_specs,
            out_specs=pl.BlockSpec((1, s_h, s_w, row_tile, wq, cp),
                                   lambda n, t: (n, 0, 0, t, 0, 0)),
        ),
        compiler_params=pltpu.CompilerParams(
            dimension_semantics=("parallel", "parallel"),
            vmem_limit_bytes=int(vmem_cap * 0.8)),
        cost_estimate=pl.CostEstimate(flops=flops, transcendentals=0,
                                      bytes_accessed=bytes_accessed),
    )(x_slabs, *w_mats, bias_p)

    # Phase interleave: y[n, ph + s_h*qy, pw + s_w*qx, c] = y_ph[n, ph, pw, qy, qx, c].
    # Plus crop, Cout slice, NCHW transpose and f32 upcast (one fused XLA transpose pass).
    y = jnp.transpose(y_ph, (0, 3, 1, 4, 2, 5)).reshape(N, hq * s_h, wq * s_w, cp)
    y = y[:, :Ho, :Wo, :Cout]
    return jnp.transpose(y, (0, 3, 1, 2)).astype(x.dtype)


# -------------------------- deterministic "module" ----------------------------
def init_quaternion_transpose_conv_params(key, in_channels, out_channels, kernel_size):
    """Shapes follow QuaternionTransposeConv.__init__ (operation='convolution2d'):
       each component weight: (in_channels//4, out_channels//4, kH, kW); bias: (out_channels,),
       bias zero-initialized as in reset_parameters.  Values are a deterministic synthetic init."""
    kH, kW = _pair(kernel_size)
    w_shape = (in_channels // 4, out_channels // 4, kH, kW)
    fan = (in_channels // 4) * kH * kW
    scale = 1.0 / math.sqrt(2.0 * max(fan, 1))
    kr, ki, kj, kk = jax.random.split(key, 4)
    r_w = jax.random.uniform(kr, w_shape, jnp.float32, -scale, scale)
    i_w = jax.random.uniform(ki, w_shape, jnp.float32, -scale, scale)
    j_w = jax.random.uniform(kj, w_shape, jnp.float32, -scale, scale)
    k_w = jax.random.uniform(kk, w_shape, jnp.float32, -scale, scale)
    bias = jnp.zeros((out_channels,), jnp.float32)
    return r_w, i_w, j_w, k_w, bias


# ------------------------------- reference (XLA) -------------------------------
def _reference(x, r_w, i_w, j_w, k_w, bias, stride, padding, output_padding, dilation):
    s_h, s_w = _pair(stride)
    p_h, p_w = _pair(padding)
    op_h, op_w = _pair(output_padding)
    d_h, d_w = _pair(dilation)
    row_r = jnp.concatenate([r_w, -i_w, -j_w, -k_w], axis=1)
    row_i = jnp.concatenate([i_w,  r_w, -k_w,  j_w], axis=1)
    row_j = jnp.concatenate([j_w,  k_w,  r_w, -i_w], axis=1)
    row_k = jnp.concatenate([k_w, -j_w,  i_w,  r_w], axis=1)
    W = jnp.concatenate([row_r, row_i, row_j, row_k], axis=0)        # (Cin,Cout,kH,kW)
    kH, kW = W.shape[2], W.shape[3]
    W_oihw = jnp.transpose(jnp.flip(W, axis=(2, 3)), (1, 0, 2, 3))   # (Cout,Cin,kH,kW)
    lo_h = d_h * (kH - 1) - p_h
    lo_w = d_w * (kW - 1) - p_w
    y = lax.conv_general_dilated(
        x, W_oihw, window_strides=(1, 1),
        padding=[(lo_h, lo_h + op_h), (lo_w, lo_w + op_w)],
        lhs_dilation=(s_h, s_w), rhs_dilation=(d_h, d_w),
        dimension_numbers=("NCHW", "OIHW", "NCHW"),
        precision=lax.Precision.HIGHEST)
    return y + bias[None, :, None, None]


if __name__ == "__main__":
    key = jax.random.PRNGKey(0)

    # (name, in_ch, out_ch, kernel, stride, pad, out_pad, dil, zero_bias, H, W)
    configs = [
        ("s2_k3_p1_op1",      8,  8, 3, 2, 1, 1, 1, True,   8,  8),  # standard deconv, 4 phases
        ("s1_k3_d2",          8, 16, 3, 1, 0, 0, 2, False,  8,  8),  # dilation>1, single phase
        ("s3_k2_p2_op1",      8,  8, 2, 3, 2, 1, 1, False,  8,  8),  # empty phases, big padding
        ("s2_k3_p1_op1_big",  8,  8, 3, 2, 1, 1, 1, True,  33, 33),  # multi row-tile + halo path
    ]
    N = 2

    for (name, cin, cout, ks, st, pd, opd, dil, zero_b, H, W) in configs:
        key, kp, kx, kb = jax.random.split(key, 4)
        r_w, i_w, j_w, k_w, bias = init_quaternion_transpose_conv_params(kp, cin, cout, ks)
        if not zero_b:  # exercise the bias path (module default zero-inits it)
            bias = 0.1 * jax.random.normal(kb, bias.shape, jnp.float32)
        x = jax.random.normal(kx, (N, cin, H, W), jnp.float32)

        y = quaternion_transpose_conv2d(x, r_w, i_w, j_w, k_w, bias, st, pd, opd, dil)
        y = jax.block_until_ready(y)

        ref = _reference(x, r_w, i_w, j_w, k_w, bias, st, pd, opd, dil)
        ref = jax.block_until_ready(ref)

        assert y.shape == ref.shape, (name, y.shape, ref.shape)
        err = float(jnp.max(jnp.abs(y - ref)))
        # Tolerance sized for bf16 MXU operands + bf16 output rounding (f32 accumulation).
        assert jnp.allclose(y, ref, atol=2e-2, rtol=2e-2), (name, err)

    print("KERNEL_OK")
</pallas_src>

<mosaic_0001>
module attributes {stable_mosaic.version = 11 : i64} {
  func.func @_fused_phase_kernel(%arg0: i32, %arg1: i32, %arg2: memref<1x1x9x32x8xbf16, #tpu.memory_space<vmem>>, %arg3: memref<8x128xbf16, #tpu.memory_space<vmem>>, %arg4: memref<16x128xbf16, #tpu.memory_space<vmem>>, %arg5: memref<16x128xbf16, #tpu.memory_space<vmem>>, %arg6: memref<32x128xbf16, #tpu.memory_space<vmem>>, %arg7: memref<1x128xf32, #tpu.memory_space<vmem>>, %arg8: memref<1x2x2x8x16x128xbf16, #tpu.memory_space<vmem>>) attributes {dimension_semantics = [#tpu.dimension_semantics<parallel>, #tpu.dimension_semantics<parallel>], iteration_bounds = array<i64: 2, 1>, scalar_prefetch = 0 : i64, scratch_operands = 0 : i64, tpu.core_type = #tpu.core_type<tc>, window_params = [{transform_indices = @transform_0, window_bounds = array<i64: 1, 1, 9, 32, 8>}, {pipeline_mode = #tpu.pipeline_mode<synchronous>, transform_indices = @transform_1, window_bounds = array<i64: 8, 128>}, {pipeline_mode = #tpu.pipeline_mode<synchronous>, transform_indices = @transform_2, window_bounds = array<i64: 16, 128>}, {pipeline_mode = #tpu.pipeline_mode<synchronous>, transform_indices = @transform_3, window_bounds = array<i64: 16, 128>}, {pipeline_mode = #tpu.pipeline_mode<synchronous>, transform_indices = @transform_4, window_bounds = array<i64: 32, 128>}, {pipeline_mode = #tpu.pipeline_mode<synchronous>, transform_indices = @transform_5, window_bounds = array<i64: 1, 128>}, {transform_indices = @transform_6, window_bounds = array<i64: 1, 2, 2, 8, 16, 128>}]} {
    %c0 = arith.constant 0 : index
    %c0_0 = arith.constant 0 : index
    %0 = vector.load %arg7[%c0, %c0_0] : memref<1x128xf32, #tpu.memory_space<vmem>>, vector<1x128xf32>
    %c0_1 = arith.constant 0 : index
    %c0_2 = arith.constant 0 : index
    %c0_3 = arith.constant 0 : index
    %c0_4 = arith.constant 0 : index
    %c0_5 = arith.constant 0 : index
    %1 = vector.load %arg2[%c0_1, %c0_2, %c0_3, %c0_4, %c0_5] : memref<1x1x9x32x8xbf16, #tpu.memory_space<vmem>>, vector<1x1x8x16x8xbf16>
    %2 = vector.shape_cast %1 : vector<1x1x8x16x8xbf16> to vector<8x16x8xbf16>
    %3 = vector.shape_cast %2 : vector<8x16x8xbf16> to vector<128x8xbf16>
    %c0_6 = arith.constant 0 : index
    %c0_7 = arith.constant 0 : index
    %4 = vector.load %arg3[%c0_6, %c0_7] : memref<8x128xbf16, #tpu.memory_space<vmem>>, vector<8x128xbf16>
    %cst = arith.constant dense<0.000000e+00> : vector<128x128xf32>
    %5 = tpu.matmul %3, %4, %cst {dimension_numbers = #tpu.dot_dimension_numbers<[1], [0], [0], [1], [0, 0, 1, 1], [], []>} : vector<128x8xbf16>, vector<8x128xbf16>, vector<128x128xf32> -> vector<128x128xf32>
    %6 = vector.broadcast %0 : vector<1x128xf32> to vector<128x128xf32>
    %7 = arith.addf %5, %6 : vector<128x128xf32>
    %8 = vector.shape_cast %7 : vector<128x128xf32> to vector<8x16x128xf32>
    %9 = arith.truncf %8 : vector<8x16x128xf32> to vector<8x16x128xbf16>
    %c0_8 = arith.constant 0 : index
    %c0_9 = arith.constant 0 : index
    %c0_10 = arith.constant 0 : index
    %c0_11 = arith.constant 0 : index
    %c0_12 = arith.constant 0 : index
    %c0_13 = arith.constant 0 : index
    %10 = vector.load %arg8[%c0_8, %c0_9, %c0_10, %c0_11, %c0_12, %c0_13] : memref<1x2x2x8x16x128xbf16, #tpu.memory_space<vmem>>, vector<1x1x1x8x16x128xbf16>
    %11 = vector.shape_cast %10 : vector<1x1x1x8x16x128xbf16> to vector<8x16x128xbf16>
    %12 = vector.shape_cast %9 : vector<8x16x128xbf16> to vector<1x1x1x8x16x128xbf16>
    tpu.vector_store %arg8[%c0_8, %c0_9, %c0_10, %c0_11, %c0_12, %c0_13], %12 {strides = array<i32>} : memref<1x2x2x8x16x128xbf16, #tpu.memory_space<vmem>>, vector<1x1x1x8x16x128xbf16>,
    %c0_14 = arith.constant 0 : index
    %c0_15 = arith.constant 0 : index
    %c0_16 = arith.constant 0 : index
    %c0_17 = arith.constant 0 : index
    %c0_18 = arith.constant 0 : index
    %13 = vector.load %arg2[%c0_14, %c0_15, %c0_16, %c0_17, %c0_18] : memref<1x1x9x32x8xbf16, #tpu.memory_space<vmem>>, vector<1x1x8x16x8xbf16>
    %14 = vector.shape_cast %13 : vector<1x1x8x16x8xbf16> to vector<8x16x8xbf16>
    %15 = vector.shape_cast %14 : vector<8x16x8xbf16> to vector<128x8xbf16>
    %c0_19 = arith.constant 0 : index
    %c0_20 = arith.constant 0 : index
    %c0_21 = arith.constant 0 : index
    %c1 = arith.constant 1 : index
    %c0_22 = arith.constant 0 : index
    %16 = vector.load %arg2[%c0_19, %c0_20, %c0_21, %c1, %c0_22] : memref<1x1x9x32x8xbf16, #tpu.memory_space<vmem>>, vector<1x1x8x16x8xbf16>
    %17 = vector.shape_cast %16 : vector<1x1x8x16x8xbf16> to vector<8x16x8xbf16>
    %18 = vector.shape_cast %17 : vector<8x16x8xbf16> to vector<128x8xbf16>
    %19 = tpu.concatenate %15, %18 in 1 : vector<128x8xbf16>, vector<128x8xbf16> -> vector<128x16xbf16>
    %c0_23 = arith.constant 0 : index
    %c0_24 = arith.constant 0 : index
    %20 = vector.load %arg4[%c0_23, %c0_24] : memref<16x128xbf16, #tpu.memory_space<vmem>>, vector<16x128xbf16>
    %cst_25 = arith.constant dense<0.000000e+00> : vector<128x128xf32>
    %21 = tpu.matmul %19, %20, %cst_25 {dimension_numbers = #tpu.dot_dimension_numbers<[1], [0], [0], [1], [0, 0, 1, 1], [], []>} : vector<128x16xbf16>, vector<16x128xbf16>, vector<128x128xf32> -> vector<128x128xf32>
    %22 = vector.broadcast %0 : vector<1x128xf32> to vector<128x128xf32>
    %23 = arith.addf %21, %22 : vector<128x128xf32>
    %24 = vector.shape_cast %23 : vector<128x128xf32> to vector<8x16x128xf32>
    %25 = arith.truncf %24 : vector<8x16x128xf32> to vector<8x16x128xbf16>
    %c0_26 = arith.constant 0 : index
    %c0_27 = arith.constant 0 : index
    %c1_28 = arith.constant 1 : index
    %c0_29 = arith.constant 0 : index
    %c0_30 = arith.constant 0 : index
    %c0_31 = arith.constant 0 : index
    %26 = vector.load %arg8[%c0_26, %c0_27, %c1_28, %c0_29, %c0_30, %c0_31] : memref<1x2x2x8x16x128xbf16, #tpu.memory_space<vmem>>, vector<1x1x1x8x16x128xbf16>
    %27 = vector.shape_cast %26 : vector<1x1x1x8x16x128xbf16> to vector<8x16x128xbf16>
    %28 = vector.shape_cast %25 : vector<8x16x128xbf16> to vector<1x1x1x8x16x128xbf16>
    tpu.vector_store %arg8[%c0_26, %c0_27, %c1_28, %c0_29, %c0_30, %c0_31], %28 {strides = array<i32>} : memref<1x2x2x8x16x128xbf16, #tpu.memory_space<vmem>>, vector<1x1x1x8x16x128xbf16>,
    %c0_32 = arith.constant 0 : index
    %c0_33 = arith.constant 0 : index
    %c0_34 = arith.constant 0 : index
    %c0_35 = arith.constant 0 : index
    %c0_36 = arith.constant 0 : index
    %29 = vector.load %arg2[%c0_32, %c0_33, %c0_34, %c0_35, %c0_36] : memref<1x1x9x32x8xbf16, #tpu.memory_space<vmem>>, vector<1x1x8x16x8xbf16>
    %30 = vector.shape_cast %29 : vector<1x1x8x16x8xbf16> to vector<8x16x8xbf16>
    %31 = vector.shape_cast %30 : vector<8x16x8xbf16> to vector<128x8xbf16>
    %c0_37 = arith.constant 0 : index
    %c0_38 = arith.constant 0 : index
    %c1_39 = arith.constant 1 : index
    %c0_40 = arith.constant 0 : index
    %c0_41 = arith.constant 0 : index
    %32 = vector.load %arg2[%c0_37, %c0_38, %c1_39, %c0_40, %c0_41] : memref<1x1x9x32x8xbf16, #tpu.memory_space<vmem>>, vector<1x1x8x16x8xbf16>
    %33 = vector.shape_cast %32 : vector<1x1x8x16x8xbf16> to vector<8x16x8xbf16>
    %34 = vector.shape_cast %33 : vector<8x16x8xbf16> to vector<128x8xbf16>
    %35 = tpu.concatenate %31, %34 in 1 : vector<128x8xbf16>, vector<128x8xbf16> -> vector<128x16xbf16>
    %c0_42 = arith.constant 0 : index
    %c0_43 = arith.constant 0 : index
    %36 = vector.load %arg5[%c0_42, %c0_43] : memref<16x128xbf16, #tpu.memory_space<vmem>>, vector<16x128xbf16>
    %cst_44 = arith.constant dense<0.000000e+00> : vector<128x128xf32>
    %37 = tpu.matmul %35, %36, %cst_44 {dimension_numbers = #tpu.dot_dimension_numbers<[1], [0], [0], [1], [0, 0, 1, 1], [], []>} : vector<128x16xbf16>, vector<16x128xbf16>, vector<128x128xf32> -> vector<128x128xf32>
    %38 = vector.broadcast %0 : vector<1x128xf32> to vector<128x128xf32>
    %39 = arith.addf %37, %38 : vector<128x128xf32>
    %40 = vector.shape_cast %39 : vector<128x128xf32> to vector<8x16x128xf32>
    %41 = arith.truncf %40 : vector<8x16x128xf32> to vector<8x16x128xbf16>
    %c0_45 = arith.constant 0 : index
    %c1_46 = arith.constant 1 : index
    %c0_47 = arith.constant 0 : index
    %c0_48 = arith.constant 0 : index
    %c0_49 = arith.constant 0 : index
    %c0_50 = arith.constant 0 : index
    %42 = vector.load %arg8[%c0_45, %c1_46, %c0_47, %c0_48, %c0_49, %c0_50] : memref<1x2x2x8x16x128xbf16, #tpu.memory_space<vmem>>, vector<1x1x1x8x16x128xbf16>
    %43 = vector.shape_cast %42 : vector<1x1x1x8x16x128xbf16> to vector<8x16x128xbf16>
    %44 = vector.shape_cast %41 : vector<8x16x128xbf16> to vector<1x1x1x8x16x128xbf16>
    tpu.vector_store %arg8[%c0_45, %c1_46, %c0_47, %c0_48, %c0_49, %c0_50], %44 {strides = array<i32>} : memref<1x2x2x8x16x128xbf16, #tpu.memory_space<vmem>>, vector<1x1x1x8x16x128xbf16>,
    %c0_51 = arith.constant 0 : index
    %c0_52 = arith.constant 0 : index
    %c0_53 = arith.constant 0 : index
    %c0_54 = arith.constant 0 : index
    %c0_55 = arith.constant 0 : index
    %45 = vector.load %arg2[%c0_51, %c0_52, %c0_53, %c0_54, %c0_55] : memref<1x1x9x32x8xbf16, #tpu.memory_space<vmem>>, vector<1x1x8x16x8xbf16>
    %46 = vector.shape_cast %45 : vector<1x1x8x16x8xbf16> to vector<8x16x8xbf16>
    %47 = vector.shape_cast %46 : vector<8x16x8xbf16> to vector<128x8xbf16>
    %c0_56 = arith.constant 0 : index
    %c0_57 = arith.constant 0 : index
    %c0_58 = arith.constant 0 : index
    %c1_59 = arith.constant 1 : index
    %c0_60 = arith.constant 0 : index
    %48 = vector.load %arg2[%c0_56, %c0_57, %c0_58, %c1_59, %c0_60] : memref<1x1x9x32x8xbf16, #tpu.memory_space<vmem>>, vector<1x1x8x16x8xbf16>
    %49 = vector.shape_cast %48 : vector<1x1x8x16x8xbf16> to vector<8x16x8xbf16>
    %50 = vector.shape_cast %49 : vector<8x16x8xbf16> to vector<128x8xbf16>
    %c0_61 = arith.constant 0 : index
    %c0_62 = arith.constant 0 : index
    %c1_63 = arith.constant 1 : index
    %c0_64 = arith.constant 0 : index
    %c0_65 = arith.constant 0 : index
    %51 = vector.load %arg2[%c0_61, %c0_62, %c1_63, %c0_64, %c0_65] : memref<1x1x9x32x8xbf16, #tpu.memory_space<vmem>>, vector<1x1x8x16x8xbf16>
    %52 = vector.shape_cast %51 : vector<1x1x8x16x8xbf16> to vector<8x16x8xbf16>
    %53 = vector.shape_cast %52 : vector<8x16x8xbf16> to vector<128x8xbf16>
    %c0_66 = arith.constant 0 : index
    %c0_67 = arith.constant 0 : index
    %c1_68 = arith.constant 1 : index
    %c1_69 = arith.constant 1 : index
    %c0_70 = arith.constant 0 : index
    %54 = vector.load %arg2[%c0_66, %c0_67, %c1_68, %c1_69, %c0_70] : memref<1x1x9x32x8xbf16, #tpu.memory_space<vmem>>, vector<1x1x8x16x8xbf16>
    %55 = vector.shape_cast %54 : vector<1x1x8x16x8xbf16> to vector<8x16x8xbf16>
    %56 = vector.shape_cast %55 : vector<8x16x8xbf16> to vector<128x8xbf16>
    %57 = tpu.concatenate %47, %50, %53, %56 in 1 : vector<128x8xbf16>, vector<128x8xbf16>, vector<128x8xbf16>, vector<128x8xbf16> -> vector<128x32xbf16>
    %c0_71 = arith.constant 0 : index
    %c0_72 = arith.constant 0 : index
    %58 = vector.load %arg6[%c0_71, %c0_72] : memref<32x128xbf16, #tpu.memory_space<vmem>>, vector<32x128xbf16>
    %cst_73 = arith.constant dense<0.000000e+00> : vector<128x128xf32>
    %59 = tpu.matmul %57, %58, %cst_73 {dimension_numbers = #tpu.dot_dimension_numbers<[1], [0], [0], [1], [0, 0, 1, 1], [], []>} : vector<128x32xbf16>, vector<32x128xbf16>, vector<128x128xf32> -> vector<128x128xf32>
    %60 = vector.broadcast %0 : vector<1x128xf32> to vector<128x128xf32>
    %61 = arith.addf %59, %60 : vector<128x128xf32>
    %62 = vector.shape_cast %61 : vector<128x128xf32> to vector<8x16x128xf32>
    %63 = arith.truncf %62 : vector<8x16x128xf32> to vector<8x16x128xbf16>
    %c0_74 = arith.constant 0 : index
    %c1_75 = arith.constant 1 : index
    %c1_76 = arith.constant 1 : index
    %c0_77 = arith.constant 0 : index
    %c0_78 = arith.constant 0 : index
    %c0_79 = arith.constant 0 : index
    %64 = vector.load %arg8[%c0_74, %c1_75, %c1_76, %c0_77, %c0_78, %c0_79] : memref<1x2x2x8x16x128xbf16, #tpu.memory_space<vmem>>, vector<1x1x1x8x16x128xbf16>
    %65 = vector.shape_cast %64 : vector<1x1x1x8x16x128xbf16> to vector<8x16x128xbf16>
    %66 = vector.shape_cast %63 : vector<8x16x128xbf16> to vector<1x1x1x8x16x128xbf16>
    tpu.vector_store %arg8[%c0_74, %c1_75, %c1_76, %c0_77, %c0_78, %c0_79], %66 {strides = array<i32>} : memref<1x2x2x8x16x128xbf16, #tpu.memory_space<vmem>>, vector<1x1x1x8x16x128xbf16>,
    return
  }
  func.func @transform_0(%arg0: i32, %arg1: i32) -> (i32, i32, i32, i32, i32) {
    %c0_i32 = arith.constant 0 : i32
    %c0_i32_0 = arith.constant 0 : i32
    %c0_i32_1 = arith.constant 0 : i32
    %c0_i32_2 = arith.constant 0 : i32
    return %arg0, %arg1, %c0_i32, %c0_i32_0, %c0_i32_1 : i32, i32, i32, i32, i32
  }
  func.func @transform_1(%arg0: i32, %arg1: i32) -> (i32, i32) {
    %c0_i32 = arith.constant 0 : i32
    %c0_i32_0 = arith.constant 0 : i32
    %c0_i32_1 = arith.constant 0 : i32
    return %c0_i32, %c0_i32_0 : i32, i32
  }
  func.func @transform_2(%arg0: i32, %arg1: i32) -> (i32, i32) {
    %c0_i32 = arith.constant 0 : i32
    %c0_i32_0 = arith.constant 0 : i32
    %c0_i32_1 = arith.constant 0 : i32
    return %c0_i32, %c0_i32_0 : i32, i32
  }
  func.func @transform_3(%arg0: i32, %arg1: i32) -> (i32, i32) {
    %c0_i32 = arith.constant 0 : i32
    %c0_i32_0 = arith.constant 0 : i32
    %c0_i32_1 = arith.constant 0 : i32
    return %c0_i32, %c0_i32_0 : i32, i32
  }
  func.func @transform_4(%arg0: i32, %arg1: i32) -> (i32, i32) {
    %c0_i32 = arith.constant 0 : i32
    %c0_i32_0 = arith.constant 0 : i32
    %c0_i32_1 = arith.constant 0 : i32
    return %c0_i32, %c0_i32_0 : i32, i32
  }
  func.func @transform_5(%arg0: i32, %arg1: i32) -> (i32, i32) {
    %c0_i32 = arith.constant 0 : i32
    %c0_i32_0 = arith.constant 0 : i32
    %c0_i32_1 = arith.constant 0 : i32
    return %c0_i32, %c0_i32_0 : i32, i32
  }
  func.func @transform_6(%arg0: i32, %arg1: i32) -> (i32, i32, i32, i32, i32, i32) {
    %c0_i32 = arith.constant 0 : i32
    %c0_i32_0 = arith.constant 0 : i32
    %c0_i32_1 = arith.constant 0 : i32
    %c0_i32_2 = arith.constant 0 : i32
    %c0_i32_3 = arith.constant 0 : i32
    return %arg0, %c0_i32, %c0_i32_0, %arg1, %c0_i32_1, %c0_i32_2 : i32, i32, i32, i32, i32, i32
  }
}

</mosaic_0001>

<bundles_post_ra>
// kernel: tpu_custom_call.1
= control target key start
LH: loop header
LB: loop body
LE: loop exit
PB: predicated region body
PF: predicated region fallthrough
CT: control target
= control target key end

     0   :  { %11 = vsyncpa [#allocation3], 0  ;;  %s4042_s0 = inlined_call_operand.vmem [shape: bf16[2,1,9,32,8], index: 0, kind: input, shape index: {}]   ;;  %s4043_s1 = inlined_call_operand.vmem [shape: bf16[8,128], index: 1, kind: input, shape index: {}]   ;;  %s4044_s2 = inlined_call_operand.vmem [shape: bf16[16,128], index: 2, kind: input, shape index: {}]   ;;  %s4045_s3 = inlined_call_operand.vmem [shape: bf16[16,128], index: 3, kind: input, shape index: {}]   ;;  %s4046_s4 = inlined_call_operand.vmem [shape: bf16[32,128], index: 4, kind: input, shape index: {}]   ;;  %s4047_s5 = inlined_call_operand.vmem [shape: f32[1,128], index: 5, kind: input, shape index: {}]   ;;  %s4048_s6 = inlined_call_operand.hbm [shape: bf16[2,2,2,8,16,128], index: 6, kind: output, shape index: {}]  }
   0x1   :  { %13 = vsyncpa [#allocation3 + $0x1], 0  ;;  %s3294_s21 = smov 0   ;;  %s3296_s22 = smov 0  }
   0x2   :  { %s3298_s23 = smov 0   ;;  %s3300_s24 = smov 0  }
   0x3   :  { %s3302_s25 = smov 0   ;;  %s3304_s26 = smov 0  }
   0x4 LB: > { %s2406_s27 = sadd.s32 4294967295, %s3251_s26   ;;  %s2407_s28 = sadd.s32 4294967294, %s3251_s26   ;;  %s3251_s26 = sphi %s3304_s26, %s19_s26   ;;  %s3247_s25 = sphi %s3302_s25, %s4057_s25   ;;  %s3243_s24 = sphi %s3300_s24, %s4056_s24   ;;  %s3239_s23 = sphi %s3298_s23, %s4055_s23   ;;  %s3235_s22 = sphi %s3296_s22, %s4054_s22   ;;  %s3231_s21 = sphi %s3294_s21, %s4053_s21  }
   0x5   : > { %s31_s29 = sadd.s32 1, %s3247_s25  ;;  %s173_s30 = sadd.s32 1, %s3239_s23 }
   0x6   : > { %p33_p0 = scmp.ge.s32.totalorder %s31_s29, 2  ;;  %p183_p1 = scmp.ne.s32.totalorder %s3239_s23, %s3235_s22 }
   0x7   : > { %p184_p2 = scmp.eq.s32.totalorder %s2406_s27, 1  ;;  %p189_p3 = scmp.ne.s32.totalorder %s3235_s22, %s3231_s21 }
   0x8   : > { %s4059_s29 = smov (%p33_p0, %s31_s29), 0  ;;  %p190_p5 = scmp.eq.s32.totalorder %s2407_s28, 1 }
   0x9   : > { %p3334_p4 = por %p184_p2, %p183_p1  ;;  %s168_s8 = ssub.s32 %s3247_s25, %s4059_s29 }
   0xa   : > { %p2410_p6 = scmp.ge.s32.totalorder %s3251_s26, 1  ;;  %p171_p7 = scmp.eq.s32.totalorder %s168_s8, 0 }
   0xb   : > { %p3341_p8 = por %p190_p5, %p189_p3  ;;  %p235_p9 = scmp.lt.s32.totalorder %s3251_s26, 3 }
   0xc   : > { %s3347_s10 = scalar_select %p171_p7, %s3239_s23, %s173_s30  }
   0xd   : > { %p236_p10 = pnand %p2410_p6, %p235_p9 }
   0xe   : > { %p269_p11 = scmp.lt.s32.totalorder (!%p236_p10), %s3243_s24, 1  ;;  %v297_v0 = vld [vmem:[%s4043_s1] sm:$0xf] (!%p236_p10)  ;;  %vm369_vm0 = vcmask (!%p236_p10), 1043456   ;;  %vm574_vm1 = vsmask.f32 (!%p236_p10), 3328 }
   0xf   : > { %239 = sbr.rel (%p236_p10) target bundleno = 491 (0x1eb), region = 44  ;;  %3046 = vmatprep.subr.msk.bf16.mxu0 (!%p236_p10), %vm369_vm0, %v297_v0  ;;  %v371_v1 = vsel (!%p236_p10), %vm369_vm0, %v297_v0, 0  ;;  %vm575_vm2 = vsmask.f32 (!%p236_p10), 7440  ;;  %s3253_s18 = smov (!%p236_p10), 8   ;;  %vm344_vm4 = vcmask (!%p236_p10), 64512  }
  0x10   : > { %2973 = vmatpush3.bf16.msra.mxu0 (!%p236_p10), %v371_v1  ;;  %vm3379_vm3 = vmor (!%p236_p10), %vm574_vm1, %vm575_vm2  ;;  %s3254_s11 = smov (!%p236_p10), 16   ;;  %s3255_s12 = smov (!%p236_p10), 24   ;;  %vm881_vm5 = vcmask (!%p236_p10), 130048   ;;  %vm2079_vm6 = vcmask (!%p236_p10), 195584   ;;  %vm2112_vm7 = vcmask (!%p236_p10), 261120  }
  0x11   : > { %s2743_s20 = sshll.u32 (!%p236_p10), %s3243_s24, 12 }
  0x16   : > { %s270_s13 = scalar_select %p269_p11, %s3243_s24, 1 }
  0x17   : > { %s3987_s24 = scalar_lea.hbm %s4048_s6, %s2743_s20 }
  0x18   : > { %s3047_s14 = smul.u32 144, %s270_s13 }
  0x1a   : > { %s3357_s17 = scalar_lea.vmem %s4042_s0, %s3047_s14 }
  0x1b   : > { %v3360_v2 = vld [vmem:[%s3357_s17 + $0x20] sm:$0xf]  ;;  %v3363_v3 = vld [vmem:[%s3357_s17 + $0x24] sm:$0xf]  ;;  %v568_v4 = vld [vmem:[%s3357_s17 + $0x28] sm:$0x1] }
  0x1c   : > { %v626_v5 = vshrl.u32 %v3360_v2, 16  ;;  %v629_v6 = vshll.u32 %v3360_v2, 16  ;;  %v635_v7 = vshll.u32 %v3363_v3, 16  ;;  %v639_v8 = vshrl.u32 %v3363_v3, 16  ;;  %v550_v9 = vld [vmem:[%s3357_s17] sm:$0xf] }
  0x1d   : > { %v645_v10 = vshll.u32 %v568_v4, 16  ;;  %v551_v11 = vld [vmem:[%s3357_s17 + $0x4] sm:$0xf]  ;;  %v566_v12 = vld [vmem:[%s3357_s17 + $0x8] sm:$0x1]  ;;  %v578_v13 = vshrl.u32 %v550_v9, 16  ;;  %v2448_v14 = vcombine.low %v3360_v2, %v3363_v3 }
  0x1e   : > { %v628_v15 = vrot.slane %v626_v5, 4  ;;  %v631_v16 = vrot.slane %v629_v6, 5  ;;  %v637_v17 = vrot.slane %v635_v7, 5  ;;  %v641_v18 = vrot.slane %v639_v8, 4  ;;  %v556_v19 = vld [vmem:[%s3357_s17 + $0x30] sm:$0xf] }
  0x1f   : > { %v647_v20 = vrot.slane %v645_v10, 5  ;;  %v580_v21 = vrot.slane %v578_v13, 4  ;;  %v581_v22 = vshll.u32 %v550_v9, 16  ;;  %v587_v23 = vshll.u32 %v551_v11, 16  ;;  %v557_v28 = vld [vmem:[%s3357_s17 + $0x34] sm:$0xf] }
  0x20   : > { %v632_v24 = vor.u32 %v631_v16, %v628_v15  ;;  %v642_v25 = vor.u32 %v641_v18, %v637_v17  ;;  %v591_v26 = vshrl.u32 %v551_v11, 16  ;;  %v597_v27 = vshll.u32 %v566_v12, 16  ;;  %v569_v38 = vld [vmem:[%s3357_s17 + $0x38] sm:$0x1]  ;;  %v552_v43 = vld [vmem:[%s3357_s17 + $0x10] sm:$0xf] }
  0x21   : > { %v583_v30 = vrot.slane %v581_v22, 5  ;;  %v589_v31 = vrot.slane %v587_v23, 5  ;;  %v650_v32 = vshrl.u32 %v556_v19, 16  ;;  %v653_v33 = vshll.u32 %v556_v19, 16  ;;  %v553_v48 = vld [vmem:[%s3357_s17 + $0x14] sm:$0xf] }
  0x22   : > { %v633_v34 = vrot.slane %v632_v24, 4  ;;  %v643_v35 = vrot.slane %v642_v25, 4  ;;  %v593_v36 = vrot.slane %v591_v26, 4  ;;  %v599_v37 = vrot.slane %v597_v27, 5  ;;  %v567_v56 = vld [vmem:[%s3357_s17 + $0x18] sm:$0x1] }
  0x23   : > { %v584_v39 = vor.u32 %v583_v30, %v580_v21  ;;  %v652_v40 = vrot.slane %v650_v32, 4  ;;  %v655_v41 = vrot.slane %v653_v33, 5  ;;  %v659_v42 = vshll.u32 %v557_v28, 16  ;;  %v560_v62 = vld [vmem:[%s3357_s17 + $0x50] sm:$0xf] }
  0x24   : > { %v638_v44 = vsel %vm3379_vm3, %v633_v34, %v637_v17  ;;  %v648_v45 = vsel %vm3379_vm3, %v643_v35, %v647_v20  ;;  %v594_v46 = vor.u32 %v593_v36, %v589_v31  ;;  %v663_v47 = vshrl.u32 %v557_v28, 16  ;;  %v561_v5 = vld [vmem:[%s3357_s17 + $0x54] sm:$0xf]  ;;  %v571_v13 = vld [vmem:[%s3357_s17 + $0x58] sm:$0x1] }
  0x25   : > { %v2456_v49 = vcombine.low %v638_v44, %v648_v45  ;;  %v585_v50 = vrot.slane %v584_v39, 4  ;;  %v656_v51 = vor.u32 %v655_v41, %v652_v40  ;;  %v661_v52 = vrot.slane %v659_v42, 5  ;;  %v558_v20 = vld [vmem:[%s3357_s17 + $0x40] sm:$0xf]  ;;  %v559_v25 = vld [vmem:[%s3357_s17 + $0x44] sm:$0xf] }
  0x26   : > { %v595_v53 = vrot.slane %v594_v46, 4  ;;  %v665_v54 = vrot.slane %v663_v47, 4  ;;  %v669_v55 = vshll.u32 %v569_v38, 16  ;;  %v602_v57 = vshrl.u32 %v552_v43, 16  ;;  %v564_v40 = vld [vmem:[%s3357_s17 + $0x70] sm:$0xf] }
  0x27   : > { %837 = vrot.lane.b32.xlu1 %v2456_v49, %s3253_s18  ;;  %v590_v58 = vsel %vm3379_vm3, %v585_v50, %v589_v31  ;;  %v657_v59 = vrot.slane %v656_v51, 4  ;;  %v605_v60 = vshll.u32 %v552_v43, 16  ;;  %v611_v61 = vshll.u32 %v553_v48, 16 }
  0x28   : > { %v600_v63 = vsel %vm3379_vm3, %v595_v53, %v599_v37  ;;  %v666_v0 = vor.u32 %v665_v54, %v661_v52  ;;  %v671_v1 = vrot.slane %v669_v55, 5  ;;  %v604_v4 = vrot.slane %v602_v57, 4  ;;  %v570_v37 = vld [vmem:[%s3357_s17 + $0x48] sm:$0x1]  ;;  %v3124_v54 = vld [vmem:[%s3357_s17] sm:$0xff]  }
  0x29   : > { %v2454_v6 = vcombine.low %v590_v58, %v600_v63  ;;  %v662_v7 = vsel %vm3379_vm3, %v657_v59, %v661_v52  ;;  %v607_v8 = vrot.slane %v605_v60, 5  ;;  %v613_v9 = vrot.slane %v611_v61, 5  ;;  %v565_v52 = vld [vmem:[%s3357_s17 + $0x74] sm:$0xf]  ;;  %v573_v59 = vld [vmem:[%s3357_s17 + $0x78] sm:$0x1]  ;;  %2974 = vmatprep.mubr.msk.bf16.mxu0 %vm344_vm4, %v3124_v54 }
  0x2a   : > { %v667_v10 = vrot.slane %v666_v0, 4  ;;  %v615_v11 = vshrl.u32 %v553_v48, 16  ;;  %v621_v12 = vshll.u32 %v567_v56, 16  ;;  %v698_v15 = vshrl.u32 %v560_v62, 16  ;;  %v562_v60 = vld [vmem:[%s3357_s17 + $0x60] sm:$0xf] }
  0x2b   : > { %833 = vrot.lane.b32.xlu0 %v2454_v6, %s3253_s18  ;;  %v608_v16 = vor.u32 %v607_v8, %v604_v4  ;;  %v701_v17 = vshll.u32 %v560_v62, 16  ;;  %v707_v18 = vshll.u32 %v561_v5, 16  ;;  %v711_v19 = vshrl.u32 %v561_v5, 16  ;;  %v3125_v61 = vld [vmem:[%s3357_s17 + $0x10] sm:$0xff]   ;;  %v3127_v4 = vld [vmem:[%s4044_s2] sm:$0xff]  }
  0x2c   : > { %v672_v21 = vsel %vm3379_vm3, %v667_v10, %v671_v1  ;;  %v617_v22 = vrot.slane %v615_v11, 4  ;;  %v623_v23 = vrot.slane %v621_v12, 5  ;;  %v700_v24 = vrot.slane %v698_v15, 4  ;;  %v572_v10 = vld [vmem:[%s3357_s17 + $0x68] sm:$0x1]  ;;  %2975 = vmatmul.mubr.msk.bf16.vlgmr.msra.gmra.mrb[0].mxu0 %vm344_vm4, %v3125_v61  ;;  %2990 = vmatprep.subr.bf16.mxu1 %v3127_v4 }
  0x2d   : > { %v2457_v26 = vcombine.low %v662_v7, %v672_v21  ;;  %v609_v27 = vrot.slane %v608_v16, 4  ;;  %v703_v28 = vrot.slane %v701_v17, 5  ;;  %v709_v30 = vrot.slane %v707_v18, 5  ;;  %2991 = vmatpush3.bf16.msra.mxu1 %v3127_v4 }
  0x2e   : > { %v618_v31 = vor.u32 %v617_v22, %v613_v9  ;;  %v713_v32 = vrot.slane %v711_v19, 4  ;;  %v717_v33 = vshll.u32 %v571_v13, 16  ;;  %v674_v34 = vshrl.u32 %v558_v20, 16 }
  0x2f   : > { %839 = vrot.lane.b32.xlu1 %v2457_v26, %s3253_s18  ;;  %v614_v35 = vsel %vm3379_vm3, %v609_v27, %v613_v9  ;;  %v704_v36 = vor.u32 %v703_v28, %v700_v24  ;;  %v677_v38 = vshll.u32 %v558_v20, 16  ;;  %v683_v39 = vshll.u32 %v559_v25, 16  ;;  %v3428_v9 = vld [vmem:[%s3357_s17 + $0x64] sm:$0xf] }
  0x30   : > { %v619_v41 = vrot.slane %v618_v31, 4  ;;  %v714_v42 = vor.u32 %v713_v32, %v709_v30  ;;  %v719_v43 = vrot.slane %v717_v33, 5  ;;  %v676_v44 = vrot.slane %v674_v34, 4  ;;  %v3131_v20 = vld [vmem:[%s3357_s17 + $0x20] sm:$0xff]   ;;  %v3444_v31 = vld [vmem:[%s3357_s17 + $0x14] sm:$0xf] }
  0x31   : > { %v705_v45 = vrot.slane %v704_v36, 4  ;;  %v679_v46 = vrot.slane %v677_v38, 5  ;;  %v685_v47 = vrot.slane %v683_v39, 5  ;;  %v687_v48 = vshrl.u32 %v559_v25, 16  ;;  %v3437_v25 = vld [vmem:[%s3357_s17 + $0x10] sm:$0xf]  ;;  %2978 = vmatprep.mubr.msk.bf16.mxu0 %vm344_vm4, %v3131_v20 }
  0x32   : > { %v624_v49 = vsel %vm3379_vm3, %v619_v41, %v623_v23  ;;  %v715_v50 = vrot.slane %v714_v42, 4  ;;  %v693_v51 = vshll.u32 %v570_v37, 16  ;;  %v746_v53 = vshrl.u32 %v564_v40, 16  ;;  %v3132_v32 = vld [vmem:[%s3357_s17 + $0x30] sm:$0xff]   ;;  %v1448_v37 = vld [vmem:[%s3357_s17 + $0x18] sm:$0x1] }
  0x33   : > { %v2455_v55 = vcombine.low %v614_v35, %v624_v49  ;;  %v710_v56 = vsel %vm3379_vm3, %v705_v45, %v709_v30  ;;  %v680_v57 = vor.u32 %v679_v46, %v676_v44  ;;  %v689_v58 = vrot.slane %v687_v48, 4  ;;  %v3137_v38 = vld [vmem:[%s3357_s17 + $0x40] sm:$0xff]  }
  0x34   : > { %v720_v62 = vsel %vm3379_vm3, %v715_v50, %v719_v43  ;;  %v695_v63 = vrot.slane %v693_v51, 5  ;;  %v748_v0 = vrot.slane %v746_v53, 4  ;;  %v749_v1 = vshll.u32 %v564_v40, 16  ;;  %v3452_v43 = vld [vmem:[%s3357_s17] sm:$0xf]  ;;  %2979 = vmatmul.mubr.msk.bf16.gmra.mrb[4].mxu0 %vm344_vm4, %v3132_v32 }
  0x35   : > { %835 = vrot.lane.b32.xlu0 %v2455_v55, %s3253_s18  ;;  %v2459_v5 = vcombine.low %v710_v56, %v720_v62  ;;  %v681_v6 = vrot.slane %v680_v57, 4  ;;  %v690_v7 = vor.u32 %v689_v58, %v685_v47  ;;  %v755_v8 = vshll.u32 %v565_v52, 16  ;;  %v3459_v48 = vld [vmem:[%s3357_s17 + $0x4] sm:$0xf]  ;;  %2982 = vmatprep.mubr.msk.bf16.mxu0 %vm344_vm4, %v3137_v38  ;;  %v3497_v38 = vld [vmem:[%s3357_s17 + $0x20] sm:$0xf] }
  0x36   : > { %v751_v11 = vrot.slane %v749_v1, 5  ;;  %v759_v12 = vshrl.u32 %v565_v52, 16  ;;  %v765_v13 = vshll.u32 %v573_v59, 16  ;;  %v722_v15 = vshrl.u32 %v562_v60, 16 }
  0x37   : > { %843 = vrot.lane.b32.xlu1 %v2459_v5, %s3253_s18  ;;  %v686_v16 = vsel %vm3379_vm3, %v681_v6, %v685_v47  ;;  %v691_v17 = vrot.slane %v690_v7, 4  ;;  %v757_v18 = vrot.slane %v755_v8, 5  ;;  %v725_v19 = vshll.u32 %v562_v60, 16  ;;  %v3478_v8 = vld [vmem:[%s3357_s17 + $0x10] sm:$0xf] }
  0x38   : > { %v752_v21 = vor.u32 %v751_v11, %v748_v0  ;;  %v761_v22 = vrot.slane %v759_v12, 4  ;;  %v767_v23 = vrot.slane %v765_v13, 5  ;;  %v724_v24 = vrot.slane %v722_v15, 4  ;;  %v1447_v0 = vld [vmem:[%s3357_s17 + $0x8] sm:$0x1] }
  0x39   : > { %v696_v26 = vsel %vm3379_vm3, %v691_v17, %v695_v63  ;;  %v727_v27 = vrot.slane %v725_v19, 5  ;;  %v731_v28 = vshll.u32 %v3428_v9, 16  ;;  %v735_v30 = vshrl.u32 %v3428_v9, 16 }
  0x3a   : > { %v2458_v33 = vcombine.low %v686_v16, %v696_v26  ;;  %v753_v34 = vrot.slane %v752_v21, 4  ;;  %v762_v35 = vor.u32 %v761_v22, %v757_v18  ;;  %v741_v36 = vshll.u32 %v572_v10, 16  ;;  %v3138_v10 = vld [vmem:[%s3357_s17 + $0x50] sm:$0xff]   ;;  %v3142_v26 = vld [vmem:[%s3357_s17 + $0x60] sm:$0xff]  }
  0x3b   : > { %v728_v39 = vor.u32 %v727_v27, %v724_v24  ;;  %v733_v40 = vrot.slane %v731_v28, 5  ;;  %v737_v41 = vrot.slane %v735_v30, 4  ;;  %v1480_v42 = vshrl.u32 %v3437_v25, 16  ;;  %v3482_v16 = vld [vmem:[%s3357_s17 + $0x14] sm:$0xf] }
  0x3c   : > { %841 = vrot.lane.b32.xlu0 %v2458_v33, %s3253_s18  ;;  %v758_v44 = vsel %vm3379_vm3, %v753_v34, %v757_v18  ;;  %v763_v45 = vrot.slane %v762_v35, 4  ;;  %v743_v46 = vrot.slane %v741_v36, 5  ;;  %v1483_v47 = vshll.u32 %v3437_v25, 16  ;;  %v2592_v33 = vld [vmem:[%s3357_s17 + $0x18] sm:$0x1]  ;;  %2983 = vmatmul.mubr.msk.bf16.gmra.mrb[8].mxu0 %vm344_vm4, %v3138_v10 }
  0x3d   : > { %v729_v49 = vrot.slane %v728_v39, 4  ;;  %v738_v50 = vor.u32 %v737_v41, %v733_v40  ;;  %v1482_v51 = vrot.slane %v1480_v42, 4  ;;  %v1489_v52 = vshll.u32 %v3444_v31, 16  ;;  %2986 = vmatprep.mubr.msk.bf16.mxu0 %vm344_vm4, %v3142_v26 }
  0x3e   : > { %v768_v53 = vsel %vm3379_vm3, %v763_v45, %v767_v23  ;;  %v1485_v54 = vrot.slane %v1483_v47, 5  ;;  %v1493_v55 = vshrl.u32 %v3444_v31, 16  ;;  %v1499_v56 = vshll.u32 %v1448_v37, 16  ;;  %v3144_v45 = vld [vmem:[%s4045_s3] sm:$0xff]  }
  0x3f   : > { %v2461_v57 = vcombine.low %v758_v44, %v768_v53  ;;  %v734_v58 = vsel %vm3379_vm3, %v729_v49, %v733_v40  ;;  %v739_v59 = vrot.slane %v738_v50, 4  ;;  %v1491_v60 = vrot.slane %v1489_v52, 5  ;;  %v3501_v44 = vld [vmem:[%s3357_s17 + $0x24] sm:$0xf]  ;;  %v2593_v52 = vld [vmem:[%s3357_s17 + $0x28] sm:$0x1]  ;;  %3008 = vmatprep.subr.bf16.mxu0 %v3144_v45 }
  0x40   : > { %v1486_v61 = vor.u32 %v1485_v54, %v1482_v51  ;;  %v1495_v62 = vrot.slane %v1493_v55, 4  ;;  %v1501_v63 = vrot.slane %v1499_v56, 5  ;;  %v1456_v1 = vshrl.u32 %v3452_v43, 16  ;;  %v3143_v53 = vld [vmem:[%s3357_s17 + $0x70] sm:$0xff]   ;;  %3009 = vmatpush3.bf16.msra.mxu0 %v3144_v45 }
  0x41   : > { %847 = vrot.lane.b32.xlu1 %v2461_v57, %s3253_s18  ;;  %v744_v4 = vsel %vm3379_vm3, %v739_v59, %v743_v46  ;;  %v1459_v5 = vshll.u32 %v3452_v43, 16  ;;  %v1465_v6 = vshll.u32 %v3459_v48, 16  ;;  %v1469_v7 = vshrl.u32 %v3459_v48, 16  ;;  %v3108_v46 = vld [vmem:[%s3357_s17 + $0x10] sm:$0xff]  }
  0x42   : > { %v2460_v11 = vcombine.low %v734_v58, %v744_v4  ;;  %v1487_v12 = vrot.slane %v1486_v61, 4  ;;  %v1496_v13 = vor.u32 %v1495_v62, %v1491_v60  ;;  %v1458_v15 = vrot.slane %v1456_v1, 4  ;;  %v3519_v62 = vld [vmem:[%s3357_s17 + $0x30] sm:$0xf] }
  0x43   : > { %v1461_v17 = vrot.slane %v1459_v5, 5  ;;  %v1467_v18 = vrot.slane %v1465_v6, 5  ;;  %v1471_v19 = vrot.slane %v1469_v7, 4  ;;  %v1475_v20 = vshll.u32 %v1447_v0, 16  ;;  %v3524_v5 = vld [vmem:[%s3357_s17 + $0x34] sm:$0xf] }
  0x44   : > { %845 = vrot.lane.b32.xlu0 %v2460_v11, %s3253_s18  ;;  %v1492_v21 = vsel %vm3379_vm3, %v1487_v12, %v1491_v60  ;;  %v1497_v22 = vrot.slane %v1496_v13, 4  ;;  %v1672_v23 = vshrl.u32 %v3478_v8, 16  ;;  %v1675_v24 = vshll.u32 %v3478_v8, 16  ;;  %v1450_v11 = vld [vmem:[%s3357_s17 + $0x38] sm:$0x1]  ;;  %2987 = vmatmul.mubr.msk.bf16.gmra.mrb[12].mxu0 %vm344_vm4, %v3143_v53  ;;  %v3111_v53 = vld [vmem:[%s3357_s17 + $0x20] sm:$0xff]  }
  0x45   : > { %v1462_v27 = vor.u32 %v1461_v17, %v1458_v15  ;;  %v1472_v28 = vor.u32 %v1471_v19, %v1467_v18  ;;  %v1477_v30 = vrot.slane %v1475_v20, 5  ;;  %v1681_v32 = vshll.u32 %v3482_v16, 16  ;;  %v3535_v17 = vld [vmem:[%s3357_s17 + $0x20] sm:$0xf]  ;;  %v3561_v45 = vld [vmem:[%s3357_s17 + $0x30] sm:$0xf] }
  0x46   : > { %v1502_v34 = vsel %vm3379_vm3, %v1497_v22, %v1501_v63  ;;  %v1674_v35 = vrot.slane %v1672_v23, 4  ;;  %v1677_v36 = vrot.slane %v1675_v24, 5  ;;  %v1685_v37 = vshrl.u32 %v3482_v16, 16 }
  0x47   : > { %v2609_v39 = vcombine.low %v1492_v21, %v1502_v34  ;;  %v1463_v40 = vrot.slane %v1462_v27, 4  ;;  %v1473_v41 = vrot.slane %v1472_v28, 4  ;;  %v1683_v42 = vrot.slane %v1681_v32, 5  ;;  %v3548_v28 = vld [vmem:[%s3357_s17 + $0x24] sm:$0xf] }
  0x48   : > { %v1687_v47 = vrot.slane %v1685_v37, 4  ;;  %v2616_v49 = vcombine.low %v3478_v8, %v3482_v16  ;;  %v1678_v50 = vor.u32 %v1677_v36, %v1674_v35  ;;  %v1691_v51 = vshll.u32 %v2592_v33, 16  ;;  %v1449_v37 = vld [vmem:[%s3357_s17 + $0x28] sm:$0x1] }
  0x49   : > { %1929 = vrot.lane.b32.xlu1 %v2609_v39, %s3253_s18  ;;  %v1468_v54 = vsel %vm3379_vm3, %v1463_v40, %v1467_v18  ;;  %v1478_v55 = vsel %vm3379_vm3, %v1473_v41, %v1477_v30  ;;  %v1696_v56 = vshrl.u32 %v3497_v38, 16  ;;  %v1699_v57 = vshll.u32 %v3497_v38, 16  ;;  %v3541_v18 = vld [vmem:[%s4046_s4] sm:$0xff]  }
  0x4a   : > { %v2608_v58 = vcombine.low %v1468_v54, %v1478_v55  ;;  %v1679_v59 = vrot.slane %v1678_v50, 4  ;;  %v1688_v60 = vor.u32 %v1687_v47, %v1683_v42  ;;  %v1693_v61 = vrot.slane %v1691_v51, 5  ;;  %3026 = vmatprep.subr.bf16.mxu1 %v3541_v18  ;;  %v3567_v51 = vld [vmem:[%s3357_s17 + $0x34] sm:$0xf] }
  0x4b   : > { %v1698_v63 = vrot.slane %v1696_v56, 4  ;;  %v1701_v0 = vrot.slane %v1699_v57, 5  ;;  %v1705_v1 = vshll.u32 %v3501_v44, 16  ;;  %v1709_v4 = vshrl.u32 %v3501_v44, 16 }
  0x4c   : > { %1927 = vrot.lane.b32.xlu0 %v2608_v58, %s3253_s18  ;;  %v1684_v6 = vsel %vm3379_vm3, %v1679_v59, %v1683_v42  ;;  %v1689_v7 = vrot.slane %v1688_v60, 4  ;;  %v2617_v8 = vcombine.low %v3497_v38, %v3501_v44  ;;  %v1715_v10 = vshll.u32 %v2593_v52, 16 }
  0x4d   : > { %1189 = vrot.lane.b32.xlu1 %v3108_v46, %s3253_s18  ;;  %v1707_v12 = vrot.slane %v1705_v1, 5  ;;  %v1711_v13 = vrot.slane %v1709_v4, 4  ;;  %v1702_v15 = vor.u32 %v1701_v0, %v1698_v63  ;;  %v1528_v16 = vshrl.u32 %v3519_v62, 16  ;;  %v2594_v4 = vld [vmem:[%s3357_s17 + $0x38] sm:$0x1] }
  0x4e   : > { %v1694_v19 = vsel %vm3379_vm3, %v1689_v7, %v1693_v61  ;;  %v1717_v20 = vrot.slane %v1715_v10, 5  ;;  %v1531_v21 = vshll.u32 %v3519_v62, 16  ;;  %v1537_v22 = vshll.u32 %v3524_v5, 16 }
  0x4f   : > { %v2624_v23 = vcombine.low %v1684_v6, %v1694_v19  ;;  %v1703_v24 = vrot.slane %v1702_v15, 4  ;;  %v1712_v26 = vor.u32 %v1711_v13, %v1707_v12  ;;  %v1530_v27 = vrot.slane %v1528_v16, 4  ;;  %v3586_v19 = vld [vmem:[%s3357_s17 + $0x44] sm:$0xf] }
  0x50   : > { %1983 = vrot.lane.b32.xlu0 %v2616_v49, %s3254_s11  ;;  %v1533_v30 = vrot.slane %v1531_v21, 5  ;;  %v1539_v32 = vrot.slane %v1537_v22, 5  ;;  %v1541_v33 = vshrl.u32 %v3524_v5, 16  ;;  %v1547_v34 = vshll.u32 %v1450_v11, 16  ;;  %v3579_v11 = vld [vmem:[%s3357_s17 + $0x40] sm:$0xf] }
  0x51   : > { %2023 = vrot.lane.b32.xlu1 %v2624_v23, %s3255_s12  ;;  %v1708_v35 = vsel %vm3379_vm3, %v1703_v24, %v1707_v12  ;;  %v1713_v36 = vrot.slane %v1712_v26, 4  ;;  %v1504_v38 = vshrl.u32 %v3535_v17, 16  ;;  %v1507_v39 = vshll.u32 %v3535_v17, 16  ;;  %v2595_v24 = vld [vmem:[%s3357_s17 + $0x48] sm:$0x1] }
  0x52   : > { %v1534_v40 = vor.u32 %v1533_v30, %v1530_v27  ;;  %v1543_v41 = vrot.slane %v1541_v33, 4  ;;  %v1549_v42 = vrot.slane %v1547_v34, 5  ;;  %v1513_v44 = vshll.u32 %v3548_v28, 16  ;;  %v3595_v33 = vld [vmem:[%s3357_s17 + $0x50] sm:$0xf] }
  0x53   : > { %v1718_v46 = vsel %vm3379_vm3, %v1713_v36, %v1717_v20  ;;  %v1506_v47 = vrot.slane %v1504_v38, 4  ;;  %v1509_v49 = vrot.slane %v1507_v39, 5  ;;  %v1517_v50 = vshrl.u32 %v3548_v28, 16  ;;  %v3605_v39 = vld [vmem:[%s3357_s17 + $0x54] sm:$0xf] }
  0x54   : > { %1985 = vrot.lane.b32.xlu0 %v2617_v8, %s3254_s11  ;;  %v2625_v52 = vcombine.low %v1708_v35, %v1718_v46  ;;  %v1535_v54 = vrot.slane %v1534_v40, 4  ;;  %v1544_v55 = vor.u32 %v1543_v41, %v1539_v32  ;;  %v1515_v56 = vrot.slane %v1513_v44, 5  ;;  %v3112_v35 = vld [vmem:[%s3357_s17 + $0x30] sm:$0xff]  }
  0x55   : > { %v1510_v57 = vor.u32 %v1509_v49, %v1506_v47  ;;  %v1519_v58 = vrot.slane %v1517_v50, 4  ;;  %v1523_v59 = vshll.u32 %v1449_v37, 16  ;;  %v1720_v60 = vshrl.u32 %v3561_v45, 16  ;;  %v1452_v50 = vld [vmem:[%s3357_s17 + $0x58] sm:$0x1] }
  0x56   : > { %2025 = vrot.lane.b32.xlu1 %v2625_v52, %s3255_s12  ;;  %v1540_v61 = vsel %vm3379_vm3, %v1535_v54, %v1539_v32  ;;  %v1545_v63 = vrot.slane %v1544_v55, 4  ;;  %v1723_v0 = vshll.u32 %v3561_v45, 16  ;;  %v1729_v1 = vshll.u32 %v3567_v51, 16  ;;  %v3614_v55 = vld [vmem:[%s3357_s17 + $0x40] sm:$0xf] }
  0x57   : > { %v1511_v6 = vrot.slane %v1510_v57, 4  ;;  %v1520_v7 = vor.u32 %v1519_v58, %v1515_v56  ;;  %v1525_v8 = vrot.slane %v1523_v59, 5  ;;  %v1722_v10 = vrot.slane %v1720_v60, 4 }
  0x58   : > { %1191 = vrot.lane.b32.xlu0 %v3111_v53, %s3253_s18  ;;  %v1550_v12 = vsel %vm3379_vm3, %v1545_v63, %v1549_v42  ;;  %v1725_v13 = vrot.slane %v1723_v0, 5  ;;  %v1731_v15 = vrot.slane %v1729_v1, 5  ;;  %v1733_v16 = vshrl.u32 %v3567_v51, 16  ;;  %v3624_v1 = vld [vmem:[%s3357_s17 + $0x44] sm:$0xf] }
  0x59   : > { %v2611_v20 = vcombine.low %v1540_v61, %v1550_v12  ;;  %v1516_v21 = vsel %vm3379_vm3, %v1511_v6, %v1515_v56  ;;  %v1521_v22 = vrot.slane %v1520_v7, 4  ;;  %v2618_v23 = vcombine.low %v3561_v45, %v3567_v51 }
  0x5a   : > { %v1735_v26 = vrot.slane %v1733_v16, 4  ;;  %v1726_v27 = vor.u32 %v1725_v13, %v1722_v10  ;;  %v1739_v30 = vshll.u32 %v2594_v4, 16  ;;  %v1744_v32 = vshrl.u32 %v3579_v11, 16  ;;  %v1451_v10 = vld [vmem:[%s3357_s17 + $0x48] sm:$0x1] }
  0x5b   : > { %1933 = vrot.lane.b32.xlu1 %v2611_v20, %s3253_s18  ;;  %v1526_v34 = vsel %vm3379_vm3, %v1521_v22, %v1525_v8  ;;  %v1747_v36 = vshll.u32 %v3579_v11, 16  ;;  %v1753_v37 = vshll.u32 %v3586_v19, 16  ;;  %v1757_v38 = vshrl.u32 %v3586_v19, 16 }
  0x5c   : > { %v2610_v40 = vcombine.low %v1516_v21, %v1526_v34  ;;  %v1727_v41 = vrot.slane %v1726_v27, 4  ;;  %v1736_v42 = vor.u32 %v1735_v26, %v1731_v15  ;;  %v1741_v44 = vrot.slane %v1739_v30, 5 }
  0x5d   : > { %v1746_v45 = vrot.slane %v1744_v32, 4  ;;  %v1749_v46 = vrot.slane %v1747_v36, 5  ;;  %v1755_v47 = vrot.slane %v1753_v37, 5  ;;  %v1759_v49 = vrot.slane %v1757_v38, 4  ;;  %v3642_v37 = vld [vmem:[%s3357_s17 + $0x54] sm:$0xf] }
  0x5e   : > { %1931 = vrot.lane.b32.xlu0 %v2610_v40, %s3253_s18  ;;  %v1732_v51 = vsel %vm3379_vm3, %v1727_v41, %v1731_v15  ;;  %v1737_v52 = vrot.slane %v1736_v42, 4  ;;  %v2619_v53 = vcombine.low %v3579_v11, %v3586_v19  ;;  %v1763_v54 = vshll.u32 %v2595_v24, 16  ;;  %v3628_v11 = vld [vmem:[%s3357_s17 + $0x50] sm:$0xf]  ;;  %v2596_v38 = vld [vmem:[%s3357_s17 + $0x58] sm:$0x1] }
  0x5f   : > { %1193 = vrot.lane.b32.xlu1 %v3112_v35, %s3253_s18  ;;  %v1750_v56 = vor.u32 %v1749_v46, %v1746_v45  ;;  %v1760_v57 = vor.u32 %v1759_v49, %v1755_v47  ;;  %v1576_v58 = vshrl.u32 %v3595_v33, 16  ;;  %v1579_v59 = vshll.u32 %v3595_v33, 16  ;;  %v3648_v45 = vld [vmem:[%s3357_s17 + $0x60] sm:$0xf] }
  0x60   : > { %v1742_v60 = vsel %vm3379_vm3, %v1737_v52, %v1741_v44  ;;  %v1765_v61 = vrot.slane %v1763_v54, 5  ;;  %v1585_v63 = vshll.u32 %v3605_v39, 16  ;;  %v1589_v0 = vshrl.u32 %v3605_v39, 16 }
  0x61   : > { %v2626_v4 = vcombine.low %v1732_v51, %v1742_v60  ;;  %v1751_v6 = vrot.slane %v1750_v56, 4  ;;  %v1761_v7 = vrot.slane %v1760_v57, 4  ;;  %v1578_v8 = vrot.slane %v1576_v58, 4  ;;  %v3657_v56 = vld [vmem:[%s3357_s17 + $0x64] sm:$0xf] }
  0x62   : > { %1987 = vrot.lane.b32.xlu0 %v2618_v23, %s3254_s11  ;;  %v1581_v12 = vrot.slane %v1579_v59, 5  ;;  %v1587_v13 = vrot.slane %v1585_v63, 5  ;;  %v1591_v15 = vrot.slane %v1589_v0, 4  ;;  %v1595_v16 = vshll.u32 %v1452_v50, 16  ;;  %v3115_v23 = vld [vmem:[%s3357_s17 + $0x40] sm:$0xff]  }
  0x63   : > { %2027 = vrot.lane.b32.xlu1 %v2626_v4, %s3255_s12  ;;  %v1756_v19 = vsel %vm3379_vm3, %v1751_v6, %v1755_v47  ;;  %v1766_v20 = vsel %vm3379_vm3, %v1761_v7, %v1765_v61  ;;  %v1552_v21 = vshrl.u32 %v3614_v55, 16  ;;  %v1555_v22 = vshll.u32 %v3614_v55, 16  ;;  %v3116_v61 = vld [vmem:[%s3357_s17 + $0x50] sm:$0xff]   ;;  %v2597_v7 = vld [vmem:[%s3357_s17 + $0x68] sm:$0x1] }
  0x64   : > { %v2627_v24 = vcombine.low %v1756_v19, %v1766_v20  ;;  %v1582_v26 = vor.u32 %v1581_v12, %v1578_v8  ;;  %v1592_v27 = vor.u32 %v1591_v15, %v1587_v13  ;;  %v1597_v30 = vrot.slane %v1595_v16, 5  ;;  %v3671_v15 = vld [vmem:[%s3357_s17 + $0x70] sm:$0xf] }
  0x65   : > { %v1554_v32 = vrot.slane %v1552_v21, 4  ;;  %v1557_v34 = vrot.slane %v1555_v22, 5  ;;  %v1561_v35 = vshll.u32 %v3624_v1, 16  ;;  %v1565_v36 = vshrl.u32 %v3624_v1, 16 }
  0x66   : > { %1989 = vrot.lane.b32.xlu0 %v2619_v53, %s3254_s11  ;;  %v1583_v40 = vrot.slane %v1582_v26, 4  ;;  %v1593_v41 = vrot.slane %v1592_v27, 4  ;;  %v1571_v42 = vshll.u32 %v1451_v10, 16  ;;  %v1768_v44 = vshrl.u32 %v3628_v11, 16 }
  0x67   : > { %2029 = vrot.lane.b32.xlu1 %v2627_v24, %s3255_s12  ;;  %v1558_v46 = vor.u32 %v1557_v34, %v1554_v32  ;;  %v1563_v47 = vrot.slane %v1561_v35, 5  ;;  %v1567_v49 = vrot.slane %v1565_v36, 4  ;;  %v1771_v50 = vshll.u32 %v3628_v11, 16 }
  0x68   : > { %v1588_v51 = vsel %vm3379_vm3, %v1583_v40, %v1587_v13  ;;  %v1598_v52 = vsel %vm3379_vm3, %v1593_v41, %v1597_v30  ;;  %v1573_v53 = vrot.slane %v1571_v42, 5  ;;  %v1770_v54 = vrot.slane %v1768_v44, 4  ;;  %v1454_v40 = vld [vmem:[%s3357_s17 + $0x78] sm:$0x1]  ;;  %v3688_v41 = vld [vmem:[%s3357_s17 + $0x60] sm:$0xf] }
  0x69   : > { %v2613_v57 = vcombine.low %v1588_v51, %v1598_v52  ;;  %v1559_v58 = vrot.slane %v1558_v46, 4  ;;  %v1568_v59 = vor.u32 %v1567_v49, %v1563_v47  ;;  %v1773_v60 = vrot.slane %v1771_v50, 5 }
  0x6a   : > { %1195 = vrot.lane.b32.xlu0 %v3115_v23, %s3253_s18  ;;  %v1777_v63 = vshll.u32 %v3642_v37, 16  ;;  %v1781_v0 = vshrl.u32 %v3642_v37, 16  ;;  %v2620_v4 = vcombine.low %v3628_v11, %v3642_v37  ;;  %v1787_v6 = vshll.u32 %v2596_v38, 16  ;;  %v3675_v11 = vld [vmem:[%s3357_s17 + $0x74] sm:$0xf] }
  0x6b   : > { %1937 = vrot.lane.b32.xlu1 %v2613_v57, %s3253_s18  ;;  %v1564_v8 = vsel %vm3379_vm3, %v1559_v58, %v1563_v47  ;;  %v1569_v10 = vrot.slane %v1568_v59, 4  ;;  %v1774_v12 = vor.u32 %v1773_v60, %v1770_v54  ;;  %v1792_v13 = vshrl.u32 %v3648_v45, 16  ;;  %v3698_v57 = vld [vmem:[%s3357_s17 + $0x64] sm:$0xf] }
  0x6c   : > { %v1779_v16 = vrot.slane %v1777_v63, 5  ;;  %v1783_v19 = vrot.slane %v1781_v0, 4  ;;  %v1789_v20 = vrot.slane %v1787_v6, 5  ;;  %v1795_v21 = vshll.u32 %v3648_v45, 16 }
  0x6d   : > { %v1574_v22 = vsel %vm3379_vm3, %v1569_v10, %v1573_v53  ;;  %v1775_v24 = vrot.slane %v1774_v12, 4  ;;  %v1794_v23 = vrot.slane %v1792_v13, 4  ;;  %v1801_v26 = vshll.u32 %v3657_v56, 16  ;;  %v1453_v12 = vld [vmem:[%s3357_s17 + $0x68] sm:$0x1] }
  0x6e   : > { %v2612_v27 = vcombine.low %v1564_v8, %v1574_v22  ;;  %v1784_v30 = vor.u32 %v1783_v19, %v1779_v16  ;;  %v1797_v32 = vrot.slane %v1795_v21, 5  ;;  %v1805_v34 = vshrl.u32 %v3657_v56, 16  ;;  %v3709_v19 = vld [vmem:[%s3357_s17 + $0x70] sm:$0xf] }
  0x6f   : > { %1197 = vrot.lane.b32.xlu1 %v3116_v61, %s3253_s18  ;;  %v1780_v35 = vsel %vm3379_vm3, %v1775_v24, %v1779_v16  ;;  %v1803_v36 = vrot.slane %v1801_v26, 5  ;;  %v2621_v37 = vcombine.low %v3648_v45, %v3657_v56  ;;  %v1811_v38 = vshll.u32 %v2597_v7, 16 }
  0x70   : > { %1935 = vrot.lane.b32.xlu0 %v2612_v27, %s3253_s18  ;;  %v1785_v42 = vrot.slane %v1784_v30, 4  ;;  %v1807_v44 = vrot.slane %v1805_v34, 4  ;;  %v1798_v46 = vor.u32 %v1797_v32, %v1794_v23  ;;  %v1624_v47 = vshrl.u32 %v3671_v15, 16  ;;  %v3119_v23 = vld [vmem:[%s3357_s17 + $0x60] sm:$0xff]  }
  0x71   : > { %v1813_v49 = vrot.slane %v1811_v38, 5  ;;  %v1627_v50 = vshll.u32 %v3671_v15, 16  ;;  %v1633_v51 = vshll.u32 %v3675_v11, 16  ;;  %v1637_v52 = vshrl.u32 %v3675_v11, 16 }
  0x72   : > { %v1790_v45 = vsel %vm3379_vm3, %v1785_v42, %v1789_v20  ;;  %v1799_v53 = vrot.slane %v1798_v46, 4  ;;  %v1808_v54 = vor.u32 %v1807_v44, %v1803_v36  ;;  %v1626_v56 = vrot.slane %v1624_v47, 4  ;;  %v2598_v47 = vld [vmem:[%s3357_s17 + $0x78] sm:$0x1] }
  0x73   : > { %v2628_v58 = vcombine.low %v1780_v35, %v1790_v45  ;;  %v1629_v59 = vrot.slane %v1627_v50, 5  ;;  %v1635_v60 = vrot.slane %v1633_v51, 5  ;;  %v1639_v61 = vrot.slane %v1637_v52, 4 }
  0x74   : > { %1991 = vrot.lane.b32.xlu0 %v2620_v4, %s3254_s11  ;;  %v1804_v63 = vsel %vm3379_vm3, %v1799_v53, %v1803_v36  ;;  %v1809_v0 = vrot.slane %v1808_v54, 4  ;;  %v1643_v6 = vshll.u32 %v1454_v40, 16  ;;  %v1600_v7 = vshrl.u32 %v3688_v41, 16  ;;  %v2589_v36 = vld [vmem:[%s3357_s17 + $0x74] sm:$0xf] }
  0x75   : > { %2031 = vrot.lane.b32.xlu1 %v2628_v58, %s3255_s12  ;;  %v1630_v8 = vor.u32 %v1629_v59, %v1626_v56  ;;  %v1640_v10 = vor.u32 %v1639_v61, %v1635_v60  ;;  %v1603_v13 = vshll.u32 %v3688_v41, 16  ;;  %v1609_v16 = vshll.u32 %v3698_v57, 16 }
  0x76   : > { %v1814_v4 = vsel %vm3379_vm3, %v1809_v0, %v1813_v49  ;;  %v1645_v20 = vrot.slane %v1643_v6, 5  ;;  %v1602_v21 = vrot.slane %v1600_v7, 4  ;;  %v1613_v22 = vshrl.u32 %v3698_v57, 16  ;;  %v3120_v0 = vld [vmem:[%s3357_s17 + $0x70] sm:$0xff]  }
  0x77   : > { %v2629_v24 = vcombine.low %v1804_v63, %v1814_v4  ;;  %v1631_v26 = vrot.slane %v1630_v8, 4  ;;  %v1641_v27 = vrot.slane %v1640_v10, 4  ;;  %v1605_v30 = vrot.slane %v1603_v13, 5  ;;  %v2599_v10 = vld [vmem:[%s3357_s17 + $0x88] sm:$0x1] }
  0x78   : > { %1993 = vrot.lane.b32.xlu0 %v2621_v37, %s3254_s11  ;;  %v1611_v32 = vrot.slane %v1609_v16, 5  ;;  %v1615_v34 = vrot.slane %v1613_v22, 4  ;;  %v1619_v35 = vshll.u32 %v1453_v12, 16  ;;  %v1816_v38 = vshrl.u32 %v3709_v19, 16  ;;  %v2590_v37 = vld [vmem:[%s3357_s17 + $0x80] sm:$0xf] }
  0x79   : > { %2033 = vrot.lane.b32.xlu1 %v2629_v24, %s3255_s12  ;;  %v1636_v40 = vsel %vm3379_vm3, %v1631_v26, %v1635_v60  ;;  %v1646_v42 = vsel %vm3379_vm3, %v1641_v27, %v1645_v20  ;;  %v1606_v44 = vor.u32 %v1605_v30, %v1602_v21  ;;  %v1819_v46 = vshll.u32 %v3709_v19, 16  ;;  %v2591_v60 = vld [vmem:[%s3357_s17 + $0x84] sm:$0xf] }
  0x7a   : > { %v2615_v49 = vcombine.low %v1636_v40, %v1646_v42  ;;  %v1616_v50 = vor.u32 %v1615_v34, %v1611_v32  ;;  %v1621_v51 = vrot.slane %v1619_v35, 5  ;;  %v1818_v52 = vrot.slane %v1816_v38, 4 }
  0x7b   : > { %v1607_v45 = vrot.slane %v1606_v44, 4  ;;  %v1821_v53 = vrot.slane %v1819_v46, 5  ;;  %v1825_v54 = vshll.u32 %v2589_v36, 16  ;;  %v1829_v56 = vshrl.u32 %v2589_v36, 16 }
  0x7c   : > { %1199 = vrot.lane.b32.xlu0 %v3119_v23, %s3253_s18  ;;  %v1617_v58 = vrot.slane %v1616_v50, 4  ;;  %v1835_v59 = vshll.u32 %v2598_v47, 16  ;;  %v1840_v61 = vshrl.u32 %v2590_v37, 16  ;;  %v1843_v4 = vshll.u32 %v2590_v37, 16 }
  0x7d   : > { %1941 = vrot.lane.b32.xlu1 %v2615_v49, %s3253_s18  ;;  %v1612_v63 = vsel %vm3379_vm3, %v1607_v45, %v1611_v32  ;;  %v1827_v6 = vrot.slane %v1825_v54, 5  ;;  %v1831_v7 = vrot.slane %v1829_v56, 4  ;;  %v1822_v8 = vor.u32 %v1821_v53, %v1818_v52 }
  0x7e   : > { %v1622_v12 = vsel %vm3379_vm3, %v1617_v58, %v1621_v51  ;;  %v1837_v13 = vrot.slane %v1835_v59, 5  ;;  %v1842_v16 = vrot.slane %v1840_v61, 4  ;;  %v1849_v24 = vshll.u32 %v2591_v60, 16  ;;  %v3123_v59 = vld [vmem:[%s3357_s17 + $0x80] sm:$0xff]  }
  0x7f   : > { %v2614_v20 = vcombine.low %v1612_v63, %v1622_v12  ;;  %v1823_v21 = vrot.slane %v1822_v8, 4  ;;  %v1832_v22 = vor.u32 %v1831_v7, %v1827_v6  ;;  %v1845_v23 = vrot.slane %v1843_v4, 5  ;;  %v3161_v61 = vld [vmem:[%s3357_s17 + $0x4] sm:$0xf]  ;;  %v3162_v7 = vld [vmem:[%s3357_s17 + $0x10] sm:$0xf] }
  0x80   : > { %v1853_v26 = vshrl.u32 %v2591_v60, 16  ;;  %v1859_v27 = vshll.u32 %v2599_v10, 16  ;;  %v2622_v30 = vcombine.low %v3709_v19, %v2589_v36  ;;  %v1851_v35 = vrot.slane %v1849_v24, 5  ;;  %v3163_v8 = vld [vmem:[%s3357_s17 + $0x14] sm:$0xf] }
  0x81   : > { %1939 = vrot.lane.b32.xlu0 %v2614_v20, %s3253_s18  ;;  %1201 = vrot.lane.b32.xlu1 %v3120_v0, %s3253_s18  ;;  %v1828_v32 = vsel %vm3379_vm3, %v1823_v21, %v1827_v6  ;;  %v1833_v34 = vrot.slane %v1832_v22, 4  ;;  %v1846_v40 = vor.u32 %v1845_v23, %v1842_v16  ;;  %v2623_v50 = vcombine.low %v2590_v37, %v2591_v60  ;;  %v3160_v60 = vld [vmem:[%s3357_s17] sm:$0xf]  ;;  %v3164_v21 = vld [vmem:[%s3357_s17 + $0x30] sm:$0xf] }
  0x82   : > { %v1855_v38 = vrot.slane %v1853_v26, 4  ;;  %v1861_v49 = vrot.slane %v1859_v27, 5  ;;  %v2603_v51 = vcombine.low %v3519_v62, %v3524_v5  ;;  %v2602_v52 = vcombine.low %v3535_v17, %v3548_v28  ;;  %v3165_v22 = vld [vmem:[%s3357_s17 + $0x34] sm:$0xf]  ;;  %v3166_v23 = vld [vmem:[%s3357_s17 + $0x40] sm:$0xf] }
  0x83   : > { %v1838_v42 = vsel %vm3379_vm3, %v1833_v34, %v1837_v13  ;;  %v1847_v46 = vrot.slane %v1846_v40, 4  ;;  %v2605_v45 = vcombine.low %v3595_v33, %v3605_v39  ;;  %v2604_v37 = vcombine.low %v3614_v55, %v3624_v1  ;;  %v3149_v13 = vld [vmem:[%s4046_s4 + $0x8] sm:$0xff]   ;;  %v3167_v26 = vld [vmem:[%s3357_s17 + $0x44] sm:$0xf]  ;;  %v3151_v28 = vld [vmem:[%s3357_s17 + $0x30] sm:$0xff]  }
  0x84   : > { %v2630_v44 = vcombine.low %v1828_v32, %v1838_v42  ;;  %v1856_v47 = vor.u32 %v1855_v38, %v1851_v35  ;;  %v2607_v54 = vcombine.low %v3671_v15, %v3675_v11  ;;  %v2606_v56 = vcombine.low %v3688_v41, %v3698_v57  ;;  %v3169_v32 = vld [vmem:[%s3357_s17 + $0x54] sm:$0xf]  ;;  %v3170_v38 = vld [vmem:[%s3357_s17 + $0x60] sm:$0xf] }
  0x85   : > { %1995 = vrot.lane.b32.xlu0 %v2622_v30, %s3254_s11  ;;  %v1852_v19 = vsel %vm3379_vm3, %v1847_v46, %v1851_v35  ;;  %v2446_v29 = vcombine.low %v3160_v60, %v3161_v61  ;;  %v2447_v10 = vcombine.low %v3162_v7, %v3163_v8  ;;  %v2449_v24 = vcombine.low %v3164_v21, %v3165_v22  ;;  %v3146_v8 = vld [vmem:[%s3357_s17 + $0x10] sm:$0xff]   ;;  %v3882_v15 = vld [vmem:[%s4047_s5] ss:$0 sm:$0xff] }
  0x86   : > { %2035 = vrot.lane.b32.xlu1 %v2630_v44, %s3255_s12  ;;  %v1857_v36 = vrot.slane %v1856_v47, 4  ;;  %v2450_v27 = vcombine.low %v3166_v23, %v3167_v26  ;;  %v2452_v40 = vcombine.low %v3170_v38, %v3428_v9  ;;  %v3155_v1 = vld [vmem:[%s3357_s17 + $0x50] sm:$0xff]  }
  0x88   : > { %v1862_v53 = vsel %vm3379_vm3, %v1857_v36, %v1861_v49  ;;  %v3171_v49 = vld [vmem:[%s3357_s17 + $0x70] sm:$0xf]  ;;  %v3141_v36 = vld [vmem:[%s3357_s17] sm:$0xff]  }
  0x89   : > { %1997 = vrot.lane.b32.xlu0 %v2623_v50, %s3254_s11  ;;  %v2631_v58 = vcombine.low %v1852_v19, %v1862_v53  ;;  %v3172_v50 = vld [vmem:[%s3357_s17 + $0x74] sm:$0xf]  ;;  %v2600_v53 = vcombine.low %v3452_v43, %v3459_v48 }
  0x8a   : > { %v2453_v19 = vcombine.low %v3171_v49, %v3172_v50 }
  0x8b   : > { %2037 = vrot.lane.b32.xlu1 %v2631_v58, %s3255_s12  ;;  %s3256_s12 = smov [#allocation2]  }
  0x8c   : > { %s3177_s13 = sshll.u32 %s3256_s12, 4  ;;  %s3178_s13 = int_to_ptr.vmem [resolvable:$false] %s3177_s13 }
  0x8d   : > { %1203 = vrot.lane.b32.xlu0 %v3123_v59, %s3253_s18  ;;  %s266_s18 = sand.u32 1, %s3235_s22   ;;  %s3179_s14 = scalar_lea.vmem %s3178_s13, 8192 }
  0x8e   : > { %s3996_s8 = scalar_lea.sflag [#allocation3], %s266_s18 }
  0x99   : > { %v838_v6 = vpop.permute.xlu1 %837 }
  0x9a   : > { %v857_v4 = vsel %vm344_vm4, %v2448_v14, %v838_v6 }
  0x9d   : > { %v834_v63 = vpop.permute.xlu0 %833 }
  0x9e   : > { %v851_v0 = vsel %vm344_vm4, %v2446_v29, %v834_v63  ;;  %v2601_v63 = vcombine.low %v3437_v25, %v3444_v31 }
  0x9f   : > { %2992 = vmatprep.mubr.msk.bf16.mxu1 %vm881_vm5, %v851_v0 }
  0xa1   : > { %v840_v20 = vpop.permute.xlu1 %839 }
  0xa2   : > { %v860_v14 = vsel %vm344_vm4, %v2449_v24, %v840_v20 }
  0xa7   : > { %v836_v12 = vpop.permute.xlu0 %835 }
  0xa8   : > { %v854_v16 = vsel %vm344_vm4, %v2447_v10, %v836_v12 }
  0xa9   : > { %2993 = vmatmul.mubr.msk.bf16.vlgmr.msra.gmra.mrb[0].mxu1 %vm881_vm5, %v854_v16  ;;  %v844_v3 = vpop.permute.xlu1 %843 }
  0xaa   : > { %2996 = vmatprep.mubr.msk.bf16.mxu1 %vm881_vm5, %v857_v4  ;;  %3027 = vmatpush3.bf16.msra.mxu1 %v3541_v18  ;;  %v3168_v18 = vld [vmem:[%s3357_s17 + $0x50] sm:$0xf]  ;;  %v3150_v4 = vld [vmem:[%s3357_s17 + $0x20] sm:$0xff]  }
  0xab   : > { %3028 = vmatprep.subr.bf16.mxu1 %v3149_v13  ;;  %v2451_v34 = vcombine.low %v3168_v18, %v3169_v32 }
  0xad   : > { %v866_v44 = vsel %vm344_vm4, %v2451_v34, %v844_v3 }
  0xae   : > { %v842_v2 = vpop.permute.xlu0 %841  ;;  %3029 = vmatpush3.bf16.msra.mxu1 %v3149_v13 }
  0xaf   : > { %v863_v30 = vsel %vm344_vm4, %v2450_v27, %v842_v2 }
  0xb1   : > { %2997 = vmatmul.mubr.msk.bf16.gmra.mrb[4].mxu1 %vm881_vm5, %v860_v14 }
  0xb2   : > { %3000 = vmatprep.mubr.msk.bf16.mxu1 %vm881_vm5, %v863_v30 }
  0xb3   : > { %v848_v35 = vpop.permute.xlu1 %847 }
  0xb4   : > { %v872_v9 = vsel %vm344_vm4, %v2453_v19, %v848_v35  ;;  %v3154_v35 = vld [vmem:[%s3357_s17 + $0x40] sm:$0xff]  }
  0xb6   : > { %v846_v42 = vpop.permute.xlu0 %845 }
  0xb7   : > { %v869_v46 = vsel %vm344_vm4, %v2452_v40, %v846_v42 }
  0xb9   : > { %3001 = vmatmul.mubr.msk.bf16.gmra.mrb[8].mxu1 %vm881_vm5, %v866_v44 }
  0xba   : > { %3004 = vmatprep.mubr.msk.bf16.mxu1 %vm881_vm5, %v869_v46 }
  0xbb   : > { %v1930_v47 = vpop.permute.xlu1 %1929 }
  0xbc   : > { %v2044_v7 = vsel %vm344_vm4, %v2601_v63, %v1930_v47 }
  0xbe   : > { %v1928_v58 = vpop.permute.xlu0 %1927 }
  0xbf   : > { %v1190_v59 = vpop.permute.xlu1 %1189  ;;  %v2041_v61 = vsel %vm344_vm4, %v2600_v53, %v1928_v58  ;;  %v3158_v58 = vld [vmem:[%s3357_s17 + $0x60] sm:$0xff]  }
  0xc0   : > { %v1207_v60 = vsel %vm344_vm4, %v3141_v36, %v1190_v59 }
  0xc1   : > { %3010 = vmatprep.mubr.msk.bf16.mxu0 %vm881_vm5, %v1207_v60  ;;  %3005 = vmatmul.mubr.msk.bf16.gmra.mrb[12].mxu1 %vm881_vm5, %v872_v9 }
  0xc2   : > { %v1984_v29 = vpop.permute.xlu0 %1983 }
  0xc3   : > { %v2064_v43 = vsel %vm881_vm5, %v2041_v61, %v1984_v29  ;;  %v2024_v48 = vpop.permute.xlu1 %2023 }
  0xc4   : > { %v2081_v0 = vsel %vm2079_vm6, %v2064_v43, %v2024_v48  ;;  %v3159_v48 = vld [vmem:[%s3357_s17 + $0x70] sm:$0xff]   ;;  %s2411_s17 = sshll.u32 %s266_s18, 8 }
  0xc5   : > { %3030 = vmatprep.mubr.msk.bf16.mxu1 %vm2112_vm7, %v2081_v0  ;;  %s3891_s19 = scalar_lea.vmem [#allocation2], %s2411_s17 }
  0xc6   : > { %v1986_v6 = vpop.permute.xlu0 %1985  ;;  %s2324_s27 = sshll.u32 %s3891_s19, 4  ;;  %s3989_s27 = int_to_ptr.vmem [resolvable:$true] %s2324_s27 }
  0xc7   : > { %v2066_v10 = vsel %vm881_vm5, %v2044_v7, %v1986_v6  ;;  %s3173_s11 = scalar_lea.vmem %s3989_s27, 4096  ;;  %p3180_p1 = scmp.lt.s32.totalorder %s3989_s27, %s3178_s13 }
  0xc8   : > { %v2026_v12 = vpop.permute.xlu1 %2025  ;;  %p3174_p12 = scmp.ne.s32.totalorder %s3989_s27, %s3173_s11  ;;  %p3181_p2 = scmp.lt.s32.totalorder %s3179_s14, %s3173_s11 }
  0xc9   : > { %v2083_v13 = vsel %vm2079_vm6, %v2066_v10, %v2026_v12 }
  0xca   : > { %v1192_v16 = vpop.permute.xlu0 %1191  ;;  %3031 = vmatmul.mubr.msk.bf16.vlgmr.msra.gmra.mrb[16].mxu1 %vm2112_vm7, %v2083_v13  ;;  %p3175_p13 = pnand %p3174_p12, %p3334_p4  ;;  %p3182_p3 = por %p3181_p2, %p3180_p1 }
  0xcb   : > { %v1210_v25 = vsel %vm344_vm4, %v3146_v8, %v1192_v16 }
  0xcc   : > { %3011 = vmatmul.mubr.msk.bf16.vlgmr.msra.gmra.mrb[16].mxu0 %vm881_vm5, %v1210_v25  ;;  %p3176_p0 = pneg %p3175_p13 }
  0xcd   : > { %v1934_v31 = vpop.permute.xlu1 %1933 }
  0xce   : > { %v2050_v3 = vsel %vm344_vm4, %v2603_v51, %v1934_v31  ;;  %p3183_p5 = pnand %p3182_p3, %p3176_p0 }
  0xd0   : > { %v1932_v20 = vpop.permute.xlu0 %1931 }
  0xd1   : > { %v1194_v21 = vpop.permute.xlu1 %1193  ;;  %v2047_v24 = vsel %vm344_vm4, %v2602_v52, %v1932_v20 }
  0xd2   : > { %v1213_v22 = vsel %vm344_vm4, %v3150_v4, %v1194_v21 }
  0xd3   : > { %3014 = vmatprep.mubr.msk.bf16.mxu0 %vm881_vm5, %v1213_v22 }
  0xd4   : > { %v1988_v23 = vpop.permute.xlu0 %1987 }
  0xd5   : > { %v2068_v26 = vsel %vm881_vm5, %v2047_v24, %v1988_v23  ;;  %v2028_v27 = vpop.permute.xlu1 %2027 }
  0xd6   : > { %v2085_v2 = vsel %vm2079_vm6, %v2068_v26, %v2028_v27 }
  0xd7   : > { %3034 = vmatprep.mubr.msk.bf16.mxu1 %vm2112_vm7, %v2085_v2 }
  0xd8   : > { %v1990_v14 = vpop.permute.xlu0 %1989 }
  0xd9   : > { %v2070_v30 = vsel %vm881_vm5, %v2050_v3, %v1990_v14  ;;  %v2030_v17 = vpop.permute.xlu1 %2029 }
  0xda   : > { %v2087_v52 = vsel %vm2079_vm6, %v2070_v30, %v2030_v17 }
  0xdb   : > { %3035 = vmatmul.mubr.msk.bf16.gmra.mrb[20].mxu1 %vm2112_vm7, %v2087_v52 }
  0xdc   : > { %v1196_v18 = vpop.permute.xlu0 %1195 }
  0xdd   : > { %v1216_v32 = vsel %vm344_vm4, %v3151_v28, %v1196_v18  ;;  %v1938_v34 = vpop.permute.xlu1 %1937 }
  0xde   : > { %3015 = vmatmul.mubr.msk.bf16.gmra.mrb[20].mxu0 %vm881_vm5, %v1216_v32  ;;  %v2056_v47 = vsel %vm344_vm4, %v2605_v45, %v1938_v34 }
  0xe1   : > { %v1198_v62 = vpop.permute.xlu1 %1197 }
  0xe2   : > { %v1936_v5 = vpop.permute.xlu0 %1935  ;;  %v1219_v51 = vsel %vm344_vm4, %v3154_v35, %v1198_v62 }
  0xe3   : > { %3018 = vmatprep.mubr.msk.bf16.mxu0 %vm881_vm5, %v1219_v51  ;;  %v2053_v38 = vsel %vm344_vm4, %v2604_v37, %v1936_v5 }
  0xe6   : > { %v1992_v40 = vpop.permute.xlu0 %1991 }
  0xe7   : > { %v2072_v42 = vsel %vm881_vm5, %v2053_v38, %v1992_v40  ;;  %v2032_v44 = vpop.permute.xlu1 %2031 }
  0xe8   : > { %v2089_v46 = vsel %vm2079_vm6, %v2072_v42, %v2032_v44 }
  0xe9   : > { %3038 = vmatprep.mubr.msk.bf16.mxu1 %vm2112_vm7, %v2089_v46 }
  0xea   : > { %v1994_v49 = vpop.permute.xlu0 %1993 }
  0xeb   : > { %v2074_v50 = vsel %vm881_vm5, %v2056_v47, %v1994_v49  ;;  %v2034_v55 = vpop.permute.xlu1 %2033 }
  0xec   : > { %v2091_v37 = vsel %vm2079_vm6, %v2074_v50, %v2034_v55 }
  0xed   : > { %3039 = vmatmul.mubr.msk.bf16.gmra.mrb[24].mxu1 %vm2112_vm7, %v2091_v37 }
  0xee   : > { %v1200_v19 = vpop.permute.xlu0 %1199 }
  0xef   : > { %v1222_v36 = vsel %vm344_vm4, %v3155_v1, %v1200_v19  ;;  %v1942_v53 = vpop.permute.xlu1 %1941 }
  0xf0   : > { %3019 = vmatmul.mubr.msk.bf16.gmra.mrb[24].mxu0 %vm881_vm5, %v1222_v36  ;;  %v2062_v43 = vsel %vm344_vm4, %v2607_v54, %v1942_v53 }
  0xf3   : > { %v1940_v33 = vpop.permute.xlu0 %1939  ;;  %v1202_v39 = vpop.permute.xlu1 %1201 }
  0xf4   : > { %v1225_v45 = vsel %vm344_vm4, %v3158_v58, %v1202_v39  ;;  %v2059_v59 = vsel %vm344_vm4, %v2606_v56, %v1940_v33 }
  0xf5   : > { %3022 = vmatprep.mubr.msk.bf16.mxu0 %vm881_vm5, %v1225_v45 }
  0xf7   : > { %v1996_v9 = vpop.permute.xlu0 %1995 }
  0xf8   : > { %v2076_v60 = vsel %vm881_vm5, %v2059_v59, %v1996_v9  ;;  %v2036_v61 = vpop.permute.xlu1 %2035 }
  0xf9   : > { %v2093_v29 = vsel %vm2079_vm6, %v2076_v60, %v2036_v61 }
  0xfa   : > { %3042 = vmatprep.mubr.msk.bf16.mxu1 %vm2112_vm7, %v2093_v29 }
  0xfb   : > { %v1998_v63 = vpop.permute.xlu0 %1997 }
  0xfc   : > { %v2078_v41 = vsel %vm881_vm5, %v2062_v43, %v1998_v63 }
  0xfd   : > { %v2038_v57 = vpop.permute.xlu1 %2037 }
  0xfe   : > { %v2095_v56 = vsel %vm2079_vm6, %v2078_v41, %v2038_v57 }
  0xff   : > { %v1204_v0 = vpop.permute.xlu0 %1203  ;;  %3043 = vmatmul.mubr.msk.bf16.gmra.mrb[28].mxu1 %vm2112_vm7, %v2095_v56  ;;  %v2976_v11 = vpop.f32.mrb[0].mxu0 }
 0x100   : > { %v1228_v6 = vsel %vm344_vm4, %v3159_v48, %v1204_v0  ;;  %v416_v54 = vadd.f32 %v2976_v11, %v3882_v15  ;;  %v407_v7 = vpop.f32.mrb[1].mxu0 }
 0x101   : > { %3023 = vmatmul.mubr.msk.bf16.gmra.mrb[28].mxu0 %vm881_vm5, %v1228_v6  ;;  %v408_v8 = vadd.f32 %v3882_v15, %v407_v7  ;;  %v2977_v10 = vpop.f32.mrb[2].mxu0 }
 0x102   : > { %v419_v12 = vadd.f32 %v2977_v10, %v3882_v15  ;;  %v410_v13 = vpop.f32.mrb[3].mxu0 }
 0x103   : > { %v411_v16 = vadd.f32 %v3882_v15, %v410_v13 }
 0x104   : > { %v2752_v25 = vpack.c.bf16 %v419_v12, %v416_v54 }
 0x105   : > { %v2747_v31 = vpack.c.bf16 %v411_v16, %v408_v8 }
 0x106   : > { %2904 = vst [vmem:[%s3891_s19 + $0x8] sm:$0xff] %v2752_v25  }
 0x107   : > { %2748 = vst [vmem:[%s3891_s19] sm:$0xff] %v2747_v31   ;;  %v2980_v4 = vpop.f32.mrb[4].mxu0 }
 0x108   : > { %v432_v20 = vadd.f32 %v2980_v4, %v3882_v15  ;;  %v423_v21 = vpop.f32.mrb[5].mxu0 }
 0x109   : > { %v424_v22 = vadd.f32 %v3882_v15, %v423_v21  ;;  %v2981_v24 = vpop.f32.mrb[6].mxu0 }
 0x10a   : > { %v435_v23 = vadd.f32 %v2981_v24, %v3882_v15  ;;  %v426_v26 = vpop.f32.mrb[7].mxu0 }
 0x10b   : > { %v427_v27 = vadd.f32 %v3882_v15, %v426_v26 }
 0x10c   : > { %v2762_v2 = vpack.c.bf16 %v435_v23, %v432_v20 }
 0x10d   : > { %v2757_v3 = vpack.c.bf16 %v427_v27, %v424_v22 }
 0x10e   : > { %2906 = vst [vmem:[%s3891_s19 + $0x18] sm:$0xff] %v2762_v2  }
 0x10f   : > { %2905 = vst [vmem:[%s3891_s19 + $0x10] sm:$0xff] %v2757_v3   ;;  %v2984_v14 = vpop.f32.mrb[8].mxu0 }
 0x110   : > { %v448_v30 = vadd.f32 %v2984_v14, %v3882_v15  ;;  %v439_v17 = vpop.f32.mrb[9].mxu0 }
 0x111   : > { %v440_v28 = vadd.f32 %v3882_v15, %v439_v17  ;;  %v2985_v52 = vpop.f32.mrb[10].mxu0 }
 0x112   : > { %v451_v18 = vadd.f32 %v2985_v52, %v3882_v15  ;;  %v442_v32 = vpop.f32.mrb[11].mxu0 }
 0x113   : > { %v443_v34 = vadd.f32 %v3882_v15, %v442_v32 }
 0x114   : > { %v2772_v35 = vpack.c.bf16 %v451_v18, %v448_v30 }
 0x115   : > { %v2767_v62 = vpack.c.bf16 %v443_v34, %v440_v28 }
 0x116   : > { %2908 = vst [vmem:[%s3891_s19 + $0x28] sm:$0xff] %v2772_v35  }
 0x117   : > { %2907 = vst [vmem:[%s3891_s19 + $0x20] sm:$0xff] %v2767_v62   ;;  %v2988_v5 = vpop.f32.mrb[12].mxu0 }
 0x118   : > { %v464_v51 = vadd.f32 %v2988_v5, %v3882_v15  ;;  %v455_v38 = vpop.f32.mrb[13].mxu0 }
 0x119   : > { %v456_v40 = vadd.f32 %v3882_v15, %v455_v38  ;;  %v2989_v42 = vpop.f32.mrb[14].mxu0 }
 0x11a   : > { %v467_v44 = vadd.f32 %v2989_v42, %v3882_v15  ;;  %v458_v46 = vpop.f32.mrb[15].mxu0 }
 0x11b   : > { %v459_v47 = vadd.f32 %v3882_v15, %v458_v46 }
 0x11c   : > { %v2782_v49 = vpack.c.bf16 %v467_v44, %v464_v51 }
 0x11d   : > { %v2777_v50 = vpack.c.bf16 %v459_v47, %v456_v40 }
 0x11e   : > { %2910 = vst [vmem:[%s3891_s19 + $0x38] sm:$0xff] %v2782_v49  }
 0x11f   : > { %2909 = vst [vmem:[%s3891_s19 + $0x30] sm:$0xff] %v2777_v50  }
 0x17c   : > { %v2994_v55 = vpop.f32.mrb[0].mxu1 }
 0x17d   : > { %v932_v1 = vpop.f32.mrb[1].mxu1  ;;  %v941_v19 = vadd.f32 %v2994_v55, %v3882_v15 }
 0x17e   : > { %v2995_v37 = vpop.f32.mrb[2].mxu1  ;;  %v933_v58 = vadd.f32 %v3882_v15, %v932_v1 }
 0x17f   : > { %v944_v36 = vadd.f32 %v2995_v37, %v3882_v15  ;;  %v935_v53 = vpop.f32.mrb[3].mxu1 }
 0x180   : > { %v936_v33 = vadd.f32 %v3882_v15, %v935_v53 }
 0x181   : > { %v2792_v39 = vpack.c.bf16 %v944_v36, %v941_v19 }
 0x182   : > { %v2787_v45 = vpack.c.bf16 %v936_v33, %v933_v58 }
 0x183   : > { %2912 = vst [vmem:[%s3891_s19 + $0x48] sm:$0xff] %v2792_v39  }
 0x184   : > { %2911 = vst [vmem:[%s3891_s19 + $0x40] sm:$0xff] %v2787_v45   ;;  %v2998_v59 = vpop.f32.mrb[4].mxu1 }
 0x185   : > { %v948_v9 = vpop.f32.mrb[5].mxu1  ;;  %v957_v61 = vadd.f32 %v2998_v59, %v3882_v15 }
 0x186   : > { %v2999_v60 = vpop.f32.mrb[6].mxu1  ;;  %v949_v43 = vadd.f32 %v3882_v15, %v948_v9 }
 0x187   : > { %v960_v29 = vadd.f32 %v2999_v60, %v3882_v15  ;;  %v951_v63 = vpop.f32.mrb[7].mxu1 }
 0x188   : > { %v952_v48 = vadd.f32 %v3882_v15, %v951_v63 }
 0x189   : > { %v2802_v41 = vpack.c.bf16 %v960_v29, %v957_v61 }
 0x18a   : > { %v2797_v57 = vpack.c.bf16 %v952_v48, %v949_v43 }
 0x18b   : > { %2914 = vst [vmem:[%s3891_s19 + $0x58] sm:$0xff] %v2802_v41  }
 0x18c   : > { %2913 = vst [vmem:[%s3891_s19 + $0x50] sm:$0xff] %v2797_v57   ;;  %v3002_v56 = vpop.f32.mrb[8].mxu1 }
 0x18d   : > { %v964_v0 = vpop.f32.mrb[9].mxu1  ;;  %v973_v11 = vadd.f32 %v3002_v56, %v3882_v15 }
 0x18e   : > { %v3003_v6 = vpop.f32.mrb[10].mxu1  ;;  %v965_v8 = vadd.f32 %v3882_v15, %v964_v0 }
 0x18f   : > { %v976_v54 = vadd.f32 %v3003_v6, %v3882_v15  ;;  %v967_v7 = vpop.f32.mrb[11].mxu1 }
 0x190   : > { %v968_v10 = vadd.f32 %v3882_v15, %v967_v7 }
 0x191   : > { %v2812_v12 = vpack.c.bf16 %v976_v54, %v973_v11 }
 0x192   : > { %v2807_v13 = vpack.c.bf16 %v968_v10, %v965_v8 }
 0x193   : > { %2916 = vst [vmem:[%s3891_s19 + $0x68] sm:$0xff] %v2812_v12  }
 0x194   : > { %2915 = vst [vmem:[%s3891_s19 + $0x60] sm:$0xff] %v2807_v13   ;;  %v3006_v16 = vpop.f32.mrb[12].mxu1 }
 0x195   : > { %v980_v25 = vpop.f32.mrb[13].mxu1  ;;  %v989_v4 = vadd.f32 %v3006_v16, %v3882_v15 }
 0x196   : > { %v3007_v31 = vpop.f32.mrb[14].mxu1  ;;  %v981_v22 = vadd.f32 %v3882_v15, %v980_v25 }
 0x197   : > { %v992_v20 = vadd.f32 %v3007_v31, %v3882_v15  ;;  %v983_v21 = vpop.f32.mrb[15].mxu1 }
 0x198   : > { %v984_v24 = vadd.f32 %v3882_v15, %v983_v21 }
 0x199   : > { %v2822_v23 = vpack.c.bf16 %v992_v20, %v989_v4 }
 0x19a   : > { %v2817_v26 = vpack.c.bf16 %v984_v24, %v981_v22 }
 0x19b   : > { %2918 = vst [vmem:[%s3891_s19 + $0x78] sm:$0xff] %v2822_v23  }
 0x19c   : > { %2917 = vst [vmem:[%s3891_s19 + $0x70] sm:$0xff] %v2817_v26  }
 0x19d   : > { %v3032_v27 = vpop.f32.mrb[16].mxu1 }
 0x19e   : > { %v2163_v2 = vpop.f32.mrb[17].mxu1  ;;  %v2172_v17 = vadd.f32 %v3032_v27, %v3882_v15 }
 0x19f   : > { %v3012_v3 = vpop.f32.mrb[16].mxu0  ;;  %v3033_v14 = vpop.f32.mrb[18].mxu1  ;;  %v2164_v32 = vadd.f32 %v3882_v15, %v2163_v2 }
 0x1a0   : > { %v1287_v30 = vpop.f32.mrb[17].mxu0  ;;  %v2175_v28 = vadd.f32 %v3033_v14, %v3882_v15  ;;  %v2166_v52 = vpop.f32.mrb[19].mxu1  ;;  %v1296_v35 = vadd.f32 %v3012_v3, %v3882_v15 }
 0x1a1   : > { %v3013_v18 = vpop.f32.mrb[18].mxu0  ;;  %v2167_v34 = vadd.f32 %v3882_v15, %v2166_v52  ;;  %v1288_v38 = vadd.f32 %v3882_v15, %v1287_v30 }
 0x1a2   : > { %v1299_v62 = vadd.f32 %v3013_v18, %v3882_v15  ;;  %v1290_v5 = vpop.f32.mrb[19].mxu0  ;;  %v2872_v51 = vpack.c.bf16 %v2175_v28, %v2172_v17 }
 0x1a3   : > { %v1291_v40 = vadd.f32 %v3882_v15, %v1290_v5  ;;  %v2867_v42 = vpack.c.bf16 %v2167_v34, %v2164_v32 }
 0x1a4   : > { %v2832_v44 = vpack.c.bf16 %v1299_v62, %v1296_v35  ;;  %2928 = vst [vmem:[%s3891_s19 + $0xc8] sm:$0xff] %v2872_v51  }
 0x1a5   : > { %v2827_v46 = vpack.c.bf16 %v1291_v40, %v1288_v38  ;;  %2927 = vst [vmem:[%s3891_s19 + $0xc0] sm:$0xff] %v2867_v42  }
 0x1a6   : > { %2920 = vst [vmem:[%s3891_s19 + $0x88] sm:$0xff] %v2832_v44  }
 0x1a7   : > { %2919 = vst [vmem:[%s3891_s19 + $0x80] sm:$0xff] %v2827_v46  }
 0x1ae   : > { %v3036_v47 = vpop.f32.mrb[20].mxu1 }
 0x1af   : > { %v2179_v49 = vpop.f32.mrb[21].mxu1  ;;  %v2188_v1 = vadd.f32 %v3036_v47, %v3882_v15 }
 0x1b0   : > { %v3037_v50 = vpop.f32.mrb[22].mxu1  ;;  %v2180_v53 = vadd.f32 %v3882_v15, %v2179_v49 }
 0x1b1   : > { %v3016_v55 = vpop.f32.mrb[20].mxu0  ;;  %v2191_v37 = vadd.f32 %v3037_v50, %v3882_v15  ;;  %v2182_v19 = vpop.f32.mrb[23].mxu1 }
 0x1b2   : > { %v1303_v36 = vpop.f32.mrb[21].mxu0  ;;  %v2183_v58 = vadd.f32 %v3882_v15, %v2182_v19  ;;  %v1312_v45 = vadd.f32 %v3016_v55, %v3882_v15 }
 0x1b3   : > { %v3017_v33 = vpop.f32.mrb[22].mxu0  ;;  %v2882_v39 = vpack.c.bf16 %v2191_v37, %v2188_v1  ;;  %v1304_v61 = vadd.f32 %v3882_v15, %v1303_v36 }
 0x1b4   : > { %v1315_v59 = vadd.f32 %v3017_v33, %v3882_v15  ;;  %v1306_v9 = vpop.f32.mrb[23].mxu0  ;;  %v2877_v60 = vpack.c.bf16 %v2183_v58, %v2180_v53 }
 0x1b5   : > { %2930 = vst [vmem:[%s3891_s19 + $0xd8] sm:$0xff] %v2882_v39   ;;  %v1307_v29 = vadd.f32 %v3882_v15, %v1306_v9 }
 0x1b6   : > { %v2842_v63 = vpack.c.bf16 %v1315_v59, %v1312_v45  ;;  %2929 = vst [vmem:[%s3891_s19 + $0xd0] sm:$0xff] %v2877_v60  }
 0x1b7   : > { %v2837_v43 = vpack.c.bf16 %v1307_v29, %v1304_v61 }
 0x1b8   : > { %2922 = vst [vmem:[%s3891_s19 + $0x98] sm:$0xff] %v2842_v63  }
 0x1b9   : > { %2921 = vst [vmem:[%s3891_s19 + $0x90] sm:$0xff] %v2837_v43  }
 0x1c0   : > { %v3040_v48 = vpop.f32.mrb[24].mxu1 }
 0x1c1   : > { %v2195_v41 = vpop.f32.mrb[25].mxu1  ;;  %v2204_v0 = vadd.f32 %v3040_v48, %v3882_v15 }
 0x1c2   : > { %v3041_v57 = vpop.f32.mrb[26].mxu1  ;;  %v2196_v7 = vadd.f32 %v3882_v15, %v2195_v41 }
 0x1c3   : > { %v3020_v56 = vpop.f32.mrb[24].mxu0  ;;  %v2207_v6 = vadd.f32 %v3041_v57, %v3882_v15  ;;  %v2198_v11 = vpop.f32.mrb[27].mxu1 }
 0x1c4   : > { %v1319_v54 = vpop.f32.mrb[25].mxu0  ;;  %v2199_v8 = vadd.f32 %v3882_v15, %v2198_v11  ;;  %v1328_v13 = vadd.f32 %v3020_v56, %v3882_v15 }
 0x1c5   : > { %v3021_v10 = vpop.f32.mrb[26].mxu0  ;;  %v2892_v12 = vpack.c.bf16 %v2207_v6, %v2204_v0  ;;  %v1320_v4 = vadd.f32 %v3882_v15, %v1319_v54 }
 0x1c6   : > { %v1331_v16 = vadd.f32 %v3021_v10, %v3882_v15  ;;  %v1322_v25 = vpop.f32.mrb[27].mxu0  ;;  %v2887_v31 = vpack.c.bf16 %v2199_v8, %v2196_v7 }
 0x1c7   : > { %2932 = vst [vmem:[%s3891_s19 + $0xe8] sm:$0xff] %v2892_v12   ;;  %v1323_v20 = vadd.f32 %v3882_v15, %v1322_v25 }
 0x1c8   : > { %v2852_v21 = vpack.c.bf16 %v1331_v16, %v1328_v13  ;;  %2931 = vst [vmem:[%s3891_s19 + $0xe0] sm:$0xff] %v2887_v31  }
 0x1c9   : > { %v2847_v22 = vpack.c.bf16 %v1323_v20, %v1320_v4 }
 0x1ca   : > { %2924 = vst [vmem:[%s3891_s19 + $0xa8] sm:$0xff] %v2852_v21  }
 0x1cb   : > { %2923 = vst [vmem:[%s3891_s19 + $0xa0] sm:$0xff] %v2847_v22  }
 0x1d2   : > { %v3044_v24 = vpop.f32.mrb[28].mxu1 }
 0x1d3   : > { %v2211_v23 = vpop.f32.mrb[29].mxu1  ;;  %v2220_v2 = vadd.f32 %v3044_v24, %v3882_v15 }
 0x1d4   : > { %v3024_v26 = vpop.f32.mrb[28].mxu0  ;;  %v3045_v27 = vpop.f32.mrb[30].mxu1  ;;  %v2212_v17 = vadd.f32 %v3882_v15, %v2211_v23 }
 0x1d5   : > { %v1335_v3 = vpop.f32.mrb[29].mxu0  ;;  %v2223_v14 = vadd.f32 %v3045_v27, %v3882_v15  ;;  %v2214_v30 = vpop.f32.mrb[31].mxu1  ;;  %v1344_v18 = vadd.f32 %v3024_v26, %v3882_v15 }
 0x1d6   : > { %v3025_v28 = vpop.f32.mrb[30].mxu0  ;;  %v2215_v52 = vadd.f32 %v3882_v15, %v2214_v30  ;;  %v1336_v62 = vadd.f32 %v3882_v15, %v1335_v3 }
 0x1d7   : > { %v1347_v32 = vadd.f32 %v3025_v28, %v3882_v15  ;;  %v2902_v34 = vpack.c.bf16 %v2223_v14, %v2220_v2  ;;  %v1338_v35 = vpop.f32.mrb[31].mxu0 }
 0x1d8   : > { %v1339_v5 = vadd.f32 %v3882_v15, %v1338_v35  ;;  %v2897_v51 = vpack.c.bf16 %v2215_v52, %v2212_v17 }
 0x1d9   : > { %v2862_v38 = vpack.c.bf16 %v1347_v32, %v1344_v18  ;;  %2934 = vst [vmem:[%s3891_s19 + $0xf8] sm:$0xff] %v2902_v34  }
 0x1da   : > { %v2857_v40 = vpack.c.bf16 %v1339_v5, %v1336_v62  ;;  %2933 = vst [vmem:[%s3891_s19 + $0xf0] sm:$0xff] %v2897_v51  }
 0x1db   : > { %2926 = vst [vmem:[%s3891_s19 + $0xb8] sm:$0xff] %v2862_v38  }
 0x1dc   : > { %2925 = vst [vmem:[%s3891_s19 + $0xb0] sm:$0xff] %v2857_v40  }
 0x1dd   : > { %3186 = shalt.err (!%p3183_p5)
}
 0x1de   : > { %s3187_s15 = scalar_lea.hbm %s3987_s24, 4096  ;;  %s3191_s17 = scalar_lea.hbm %s4048_s6, 8192 }
 0x1df   : > { %p3188_p6 = scmp.ne.s32.totalorder %s3987_s24, %s3187_s15  ;;  %p3192_p10 = scmp.lt.u32.totalorder %s3987_s24, %s4048_s6 }
 0x1e0   : > { %p3193_p11 = scmp.lt.u32.totalorder %s3191_s17, %s3187_s15  ;;  %p3195_p13 = scmp.lt.u32.totalorder %s3187_s15, %s3987_s24 }
 0x1e1   : > { %p3189_p7 = pnand %p3188_p6, %p3334_p4 }
 0x1e2   : > { %p3194_p12 = por %p3193_p11, %p3192_p10 }
 0x1e3   : > { %p3190_p9 = pneg %p3189_p7 }
 0x1e4   : > { %p3196_p0 = por %p3195_p13, %p3194_p12 }
 0x1e6   : > { %p3197_p1 = pnand %p3196_p0, %p3190_p9 }
 0x1e8   : > { %3200 = shalt.err (!%p3197_p1)
}
 0x1e9   : > { %s3257_s28 = smov 64   ;;  %s3258_s30 = smov 4  }
 0x1ea   : > { %3048 = dma.vmem_to_hbm [thread:$0]  (%p3334_p4), %s3989_s27, 4096, %s3987_s24, %s3996_s8, %s3257_s28, %s3257_s28, %s3258_s30  }
 0x1eb PF: > { %p3054_p2 = scmp.ge.s32.totalorder %s3251_s26, 2  ;;  %s2339_s11 = sand.u32 1, %s3231_s21  }
 0x1ec   : > { %s2340_s12 = scalar_lea.sflag [#allocation3], %s2339_s11 }
 0x1ed   : > { %p3051_p3 = pnand %p3054_p2, %p3341_p8 }
 0x1ef   : > { %3226 = dma.done.wait (!%p3051_p3), %s2340_s12, 4096  }
 0x1f0   : > { %3228 = vsyncadd (!%p3051_p3), %s2340_s12, 4294963200  ;;  %s19_s26 = sadd.s32 1, %s3251_s26   ;;  %s4053_s21 = smov %s3235_s22 }
 0x1f1   : > { %p16_p5 = scmp.ge.s32.totalorder %s19_s26, 4   ;;  %s4054_s22 = smov %s3239_s23 }
 0x1f2   : > { %s4055_s23 = smov %s3347_s10  ;;  %s4056_s24 = smov %s3247_s25 }
 0x1f3   : > { %s4057_s25 = smov %s4059_s29  ;;  %18 = sbr.rel (!%p16_p5) target bundleno = 4 (0x4), region = 83 }
 0x1fa   :  { %2345 = vsyncpa [#allocation3], 1 }
 0x1fb   :  { %2347 = vsyncpa [#allocation3 + $0x1], 1 }

</bundles_post_ra>
